<compile_context>
chip_gen: v7x
topology: tpu7x:2x2x1
jax: 0.10.0
libtpu: 0.0.40
codegen_flags: <defaults>
</compile_context>

<pallas_src>
import jax
import jax.numpy as jnp
from jax.experimental import pallas as pl
from jax.experimental.pallas import tpu as pltpu

# ----------------------------- config ---------------------------------------
INPUT_SIZE = 1
N_RNN_LAYERS = 2
N_FC_LAYERS = 2
TEMPORAL_LENGTH = 8          # small seq for the demo
BIDIRECTIONAL = True         # kernel is written for the bidirectional case
RNN_HIDDEN = 32
FC_HIDDEN = 64
N_CLASSES = 4
BATCH = 2

NUM_DIR = 2 if BIDIRECTIONAL else 1
FLAT_FEATURES = RNN_HIDDEN * NUM_DIR * TEMPORAL_LENGTH   # pooling=None -> flatten


# --------------------------- fused Pallas kernel -----------------------------
def fused_model_kernel(*refs):
    """Entire MixedFCTemporalModel forward pass in a single kernel.

    Ref layout (all whole-array VMEM residents):
      refs[0]                     x2d       (B, T*D_in)  batch-first input
      per GRU layer (x N_RNN_LAYERS):
          wih_blk (2*D_in, 6H)   rows [0:D_in] see x[t] (fwd), rows [D_in:] see
                                 x[T-1-t] (bwd); gate cols [r_f r_b z_f z_b n_f n_b]
          whh_blk (2H, 6H)       block-diag hidden->gate weights for the stacked
                                 carry h = [h_fwd | h_bwd]  (B, 2H)
          bias_in (1, 6H)        b_i + b_h pre-combined for r/z,  b_in for n
          bias_hn (1, 2H)        [b_hn_fwd | b_hn_bwd]
      per FC layer (x N_FC_LAYERS):  w (in, FC_HIDDEN), b (1, FC_HIDDEN)
      final:                         w (FC_HIDDEN, N_CLASSES), b (1, N_CLASSES)
      refs[-1]                    out       (B, N_CLASSES)
    """
    T = TEMPORAL_LENGTH
    H = RNN_HIDDEN
    x_ref = refs[0]
    out_ref = refs[-1]
    B = x_ref.shape[0]

    k = 1
    xv = x_ref[...].astype(jnp.float32)
    d0 = x_ref.shape[1] // T
    # per-time-step inputs for the first GRU layer, each (B, d0)
    ys = [xv[:, t * d0:(t + 1) * d0] for t in range(T)]

    # ---------------- stacked bidirectional GRU layers -----------------------
    for _layer in range(N_RNN_LAYERS):
        wih_blk = refs[k][...]
        whh_blk = refs[k + 1][...]
        bias_in = refs[k + 2][...]
        bias_hn = refs[k + 3][...]
        k += 4
        d_l = wih_blk.shape[0] // 2              # this layer's input width

        # Hoisted input projection for ALL time steps of BOTH directions:
        # rows s*B:(s+1)*B of gi_all hold step s (fwd sees x[s], bwd sees x[T-1-s]).
        x_all = jnp.concatenate(ys, axis=0)              # (T*B, d_l), time order
        x_rev = jnp.concatenate(ys[::-1], axis=0)        # (T*B, d_l), reversed
        w_f = wih_blk[0:d_l, :]                          # -> fwd gate columns
        w_b = wih_blk[d_l:2 * d_l, :]                    # -> bwd gate columns
        if d_l == 1:     # layer 0 (input_size == 1): VPU broadcast-multiply
            gi_all = bias_in + x_all * w_f + x_rev * w_b
        else:
            gi_all = (jnp.dot(x_all, w_f, preferred_element_type=jnp.float32)
                      + jnp.dot(x_rev, w_b, preferred_element_type=jnp.float32)
                      + bias_in)                         # (T*B, 6H)

        bhn = jnp.broadcast_to(bias_hn, (B, 2 * H))      # hoisted broadcast
        h = jnp.zeros((B, 2 * H), jnp.float32)           # [h_fwd | h_bwd]
        y_f = [None] * T
        y_b = [None] * T
        for s in range(T):                               # fully unrolled (T static)
            gh = jnp.dot(h, whh_blk, preferred_element_type=jnp.float32)  # (B, 6H)
            gi = gi_all[s * B:(s + 1) * B, :]
            rz = jax.nn.sigmoid(gi[:, :4 * H] + gh[:, :4 * H])   # r|z, 4H=128 lanes
            r = rz[:, :2 * H]
            z = rz[:, 2 * H:]
            n = jnp.tanh(gi[:, 4 * H:] + r * (gh[:, 4 * H:] + bhn))
            h = (1.0 - z) * n + z * h
            y_f[s] = h[:, :H]                    # fwd output at time s
            y_b[T - 1 - s] = h[:, H:]            # bwd output at time T-1-s
        # per-time-step layer output, PyTorch order [fwd | bwd]  -> (B, 2H)
        ys = [jnp.concatenate([y_f[t], y_b[t]], axis=1) for t in range(T)]
        # TODO(synk): nn.GRU inter-layer dropout is identity (inference mode).

    # --------------- flatten (pooling=None) + ReLU + FC head -----------------
    feat = jnp.concatenate(ys, axis=1)                   # (B, T*2H) lane-dense
    act = jnp.maximum(feat, 0.0)                         # torch.relu
    for _fc in range(N_FC_LAYERS):
        w = refs[k][...]
        b = refs[k + 1][...]
        k += 2
        act = jnp.maximum(
            jnp.dot(act, w, preferred_element_type=jnp.float32) + b, 0.0)
        # TODO(synk): nn.Dropout1d(p=0.25) is identity (inference mode).
    w_out = refs[k][...]
    b_out = refs[k + 1][...]
    out_ref[...] = jnp.dot(act, w_out, preferred_element_type=jnp.float32) + b_out


# ------------------------------ wrapper ---------------------------------------
_VMEM = pl.BlockSpec(memory_space=pltpu.MemorySpace.VMEM)


@jax.jit
def model_forward(x_btd, packed):
    """x_btd: (B, T, input_size) float32, PyTorch batch_first layout."""
    B, T, d_in = x_btd.shape
    x2d = x_btd.astype(jnp.float32).reshape(B, T * d_in)
    args = [x2d] + list(packed)
    return pl.pallas_call(
        fused_model_kernel,
        out_shape=jax.ShapeDtypeStruct((B, N_CLASSES), jnp.float32),
        in_specs=[_VMEM] * len(args),
        out_specs=_VMEM,
        compiler_params=pltpu.CompilerParams(vmem_limit_bytes=32 * 1024 * 1024),
    )(*args)


# --------------------------- parameter init / packing -------------------------
def init_params(key):
    params = {"gru": [], "fc": []}
    d_in = INPUT_SIZE
    bound = 1.0 / jnp.sqrt(RNN_HIDDEN)
    for _layer in range(N_RNN_LAYERS):
        layer_p = {}
        for dname in ("fwd", "bwd"):
            key, k1, k2, k3, k4 = jax.random.split(key, 5)
            # stored transposed: (in, 3H) / (H, 3H); gate order r,z,n (PyTorch)
            wih_t = jax.random.uniform(k1, (d_in, 3 * RNN_HIDDEN), jnp.float32,
                                       -bound, bound)
            whh_t = jax.random.uniform(k2, (RNN_HIDDEN, 3 * RNN_HIDDEN),
                                       jnp.float32, -bound, bound)
            bih = jax.random.uniform(k3, (1, 3 * RNN_HIDDEN), jnp.float32,
                                     -bound, bound)
            bhh = jax.random.uniform(k4, (1, 3 * RNN_HIDDEN), jnp.float32,
                                     -bound, bound)
            layer_p[dname] = (wih_t, whh_t, bih, bhh)
        params["gru"].append(layer_p)
        d_in = RNN_HIDDEN * NUM_DIR

    def linear(key, fan_in, fan_out):
        k1, k2 = jax.random.split(key)
        b = 1.0 / jnp.sqrt(fan_in)
        w = jax.random.uniform(k1, (fan_in, fan_out), jnp.float32, -b, b)
        bias = jax.random.uniform(k2, (1, fan_out), jnp.float32, -b, b)
        return w, bias

    fan_in = FLAT_FEATURES
    for _fc in range(N_FC_LAYERS):
        key, kf = jax.random.split(key)
        params["fc"].append(linear(kf, fan_in, FC_HIDDEN))
        fan_in = FC_HIDDEN
    key, kf = jax.random.split(key)
    params["final"] = linear(kf, fan_in, N_CLASSES)
    return params


def _split_gates(m, H):
    return m[:, 0:H], m[:, H:2 * H], m[:, 2 * H:3 * H]


def _pack_gru_layer(pf, pb, H):
    """Pack fwd/bwd GRU weights into the fused-kernel block layout.

    Gate-column layout (width 6H): [r_f r_b z_f z_b n_f n_b].
    """
    wih_f, whh_f, bih_f, bhh_f = pf
    wih_b, whh_b, bih_b, bhh_b = pb
    d_in = wih_f.shape[0]
    Zi = jnp.zeros((d_in, H), jnp.float32)
    Zh = jnp.zeros((H, H), jnp.float32)

    wir_f, wiz_f, win_f = _split_gates(wih_f, H)
    wir_b, wiz_b, win_b = _split_gates(wih_b, H)
    whr_f, whz_f, whn_f = _split_gates(whh_f, H)
    whr_b, whz_b, whn_b = _split_gates(whh_b, H)

    wih_blk = jnp.concatenate([
        jnp.concatenate([wir_f, Zi, wiz_f, Zi, win_f, Zi], axis=1),   # sees x[t]
        jnp.concatenate([Zi, wir_b, Zi, wiz_b, Zi, win_b], axis=1),   # sees x[T-1-t]
    ], axis=0)                                                        # (2*d_in, 6H)
    whh_blk = jnp.concatenate([
        jnp.concatenate([whr_f, Zh, whz_f, Zh, whn_f, Zh], axis=1),   # h_fwd rows
        jnp.concatenate([Zh, whr_b, Zh, whz_b, Zh, whn_b], axis=1),   # h_bwd rows
    ], axis=0)                                                        # (2H, 6H)

    bir_f, biz_f, bin_f = _split_gates(bih_f, H)
    bir_b, biz_b, bin_b = _split_gates(bih_b, H)
    bhr_f, bhz_f, bhn_f = _split_gates(bhh_f, H)
    bhr_b, bhz_b, bhn_b = _split_gates(bhh_b, H)
    bias_in = jnp.concatenate([bir_f + bhr_f, bir_b + bhr_b,
                               biz_f + bhz_f, biz_b + bhz_b,
                               bin_f, bin_b], axis=1)                 # (1, 6H)
    bias_hn = jnp.concatenate([bhn_f, bhn_b], axis=1)                 # (1, 2H)
    return wih_blk, whh_blk, bias_in, bias_hn


def pack_params(params):
    packed = []
    for layer in range(N_RNN_LAYERS):
        p = params["gru"][layer]
        packed.extend(_pack_gru_layer(p["fwd"], p["bwd"], RNN_HIDDEN))
    for w, b in params["fc"]:
        packed.extend([w, b])
    packed.extend(list(params["final"]))
    return [jnp.asarray(a, jnp.float32) for a in packed]


# --------------------------- pure-JAX reference --------------------------------
def _gru_dir_ref(x_tbd, wih_t, whh_t, bih, bhh):
    H = whh_t.shape[0]
    hp = jax.lax.Precision.HIGHEST

    def step(h, x_t):
        gi = jnp.dot(x_t, wih_t, precision=hp) + bih
        gh = jnp.dot(h, whh_t, precision=hp) + bhh
        r = jax.nn.sigmoid(gi[:, :H] + gh[:, :H])
        z = jax.nn.sigmoid(gi[:, H:2 * H] + gh[:, H:2 * H])
        n = jnp.tanh(gi[:, 2 * H:] + r * gh[:, 2 * H:])
        h_new = (1.0 - z) * n + z * h
        return h_new, h_new

    h0 = jnp.zeros((x_tbd.shape[1], H), jnp.float32)
    _, ys = jax.lax.scan(step, h0, x_tbd)
    return ys


def model_forward_ref(x_btd, params):
    hp = jax.lax.Precision.HIGHEST
    B = x_btd.shape[0]
    h = jnp.transpose(x_btd, (1, 0, 2)).astype(jnp.float32)   # (T, B, D)
    for layer in range(N_RNN_LAYERS):
        p = params["gru"][layer]
        y_fwd = _gru_dir_ref(h, *p["fwd"])
        y_bwd = jnp.flip(_gru_dir_ref(jnp.flip(h, axis=0), *p["bwd"]), axis=0)
        h = jnp.concatenate([y_fwd, y_bwd], axis=-1)
    feat = jnp.transpose(h, (1, 0, 2)).reshape(B, -1)
    act = jnp.maximum(feat, 0.0)
    for w, b in params["fc"]:
        act = jnp.maximum(jnp.dot(act, w, precision=hp) + b, 0.0)
    wf, bf = params["final"]
    return jnp.dot(act, wf, precision=hp) + bf


# ------------------------------------ main -------------------------------------
if __name__ == "__main__":
    key = jax.random.PRNGKey(0)
    key, kx, kp = jax.random.split(key, 3)
    x = jax.random.normal(kx, (BATCH, TEMPORAL_LENGTH, INPUT_SIZE), jnp.float32)
    params = init_params(kp)
    packed = pack_params(params)

    out = jax.block_until_ready(model_forward(x, packed))
    ref = jax.block_until_ready(model_forward_ref(x, params))

    assert out.shape == (BATCH, N_CLASSES), out.shape
    err = float(jnp.max(jnp.abs(out - ref)))
    assert jnp.allclose(out, ref, atol=2e-4, rtol=2e-4), f"mismatch: max abs err {err}"
    print("KERNEL_OK")
</pallas_src>

<mosaic_0001>
module attributes {stable_mosaic.version = 11 : i64} {
  func.func @fused_model_kernel(%arg0: memref<2x8xf32, #tpu.memory_space<vmem>>, %arg1: memref<2x192xf32, #tpu.memory_space<vmem>>, %arg2: memref<64x192xf32, #tpu.memory_space<vmem>>, %arg3: memref<1x192xf32, #tpu.memory_space<vmem>>, %arg4: memref<1x64xf32, #tpu.memory_space<vmem>>, %arg5: memref<128x192xf32, #tpu.memory_space<vmem>>, %arg6: memref<64x192xf32, #tpu.memory_space<vmem>>, %arg7: memref<1x192xf32, #tpu.memory_space<vmem>>, %arg8: memref<1x64xf32, #tpu.memory_space<vmem>>, %arg9: memref<512x64xf32, #tpu.memory_space<vmem>>, %arg10: memref<1x64xf32, #tpu.memory_space<vmem>>, %arg11: memref<64x64xf32, #tpu.memory_space<vmem>>, %arg12: memref<1x64xf32, #tpu.memory_space<vmem>>, %arg13: memref<64x4xf32, #tpu.memory_space<vmem>>, %arg14: memref<1x4xf32, #tpu.memory_space<vmem>>, %arg15: memref<2x4xf32, #tpu.memory_space<vmem>>) attributes {dimension_semantics = [], scalar_prefetch = 0 : i64, scratch_operands = 0 : i64, tpu.core_type = #tpu.core_type<tc>} {
    %c0 = arith.constant 0 : index
    %c0_0 = arith.constant 0 : index
    %0 = vector.load %arg0[%c0, %c0_0] : memref<2x8xf32, #tpu.memory_space<vmem>>, vector<2x8xf32>
    %1 = vector.extract_strided_slice %0 {offsets = [0, 0], sizes = [2, 1], strides = [1, 1]} : vector<2x8xf32> to vector<2x1xf32>
    %2 = vector.extract_strided_slice %0 {offsets = [0, 1], sizes = [2, 1], strides = [1, 1]} : vector<2x8xf32> to vector<2x1xf32>
    %3 = vector.extract_strided_slice %0 {offsets = [0, 2], sizes = [2, 1], strides = [1, 1]} : vector<2x8xf32> to vector<2x1xf32>
    %4 = vector.extract_strided_slice %0 {offsets = [0, 3], sizes = [2, 1], strides = [1, 1]} : vector<2x8xf32> to vector<2x1xf32>
    %5 = vector.extract_strided_slice %0 {offsets = [0, 4], sizes = [2, 1], strides = [1, 1]} : vector<2x8xf32> to vector<2x1xf32>
    %6 = vector.extract_strided_slice %0 {offsets = [0, 5], sizes = [2, 1], strides = [1, 1]} : vector<2x8xf32> to vector<2x1xf32>
    %7 = vector.extract_strided_slice %0 {offsets = [0, 6], sizes = [2, 1], strides = [1, 1]} : vector<2x8xf32> to vector<2x1xf32>
    %8 = vector.extract_strided_slice %0 {offsets = [0, 7], sizes = [2, 1], strides = [1, 1]} : vector<2x8xf32> to vector<2x1xf32>
    %c0_1 = arith.constant 0 : index
    %c0_2 = arith.constant 0 : index
    %9 = vector.load %arg1[%c0_1, %c0_2] : memref<2x192xf32, #tpu.memory_space<vmem>>, vector<2x192xf32>
    %c0_3 = arith.constant 0 : index
    %c0_4 = arith.constant 0 : index
    %10 = vector.load %arg2[%c0_3, %c0_4] : memref<64x192xf32, #tpu.memory_space<vmem>>, vector<64x192xf32>
    %c0_5 = arith.constant 0 : index
    %c0_6 = arith.constant 0 : index
    %11 = vector.load %arg3[%c0_5, %c0_6] : memref<1x192xf32, #tpu.memory_space<vmem>>, vector<1x192xf32>
    %c0_7 = arith.constant 0 : index
    %c0_8 = arith.constant 0 : index
    %12 = vector.load %arg4[%c0_7, %c0_8] : memref<1x64xf32, #tpu.memory_space<vmem>>, vector<1x64xf32>
    %13 = tpu.concatenate %1, %2, %3, %4, %5, %6, %7, %8 in 0 : vector<2x1xf32>, vector<2x1xf32>, vector<2x1xf32>, vector<2x1xf32>, vector<2x1xf32>, vector<2x1xf32>, vector<2x1xf32>, vector<2x1xf32> -> vector<16x1xf32>
    %14 = tpu.concatenate %8, %7, %6, %5, %4, %3, %2, %1 in 0 : vector<2x1xf32>, vector<2x1xf32>, vector<2x1xf32>, vector<2x1xf32>, vector<2x1xf32>, vector<2x1xf32>, vector<2x1xf32>, vector<2x1xf32> -> vector<16x1xf32>
    %15 = vector.extract_strided_slice %9 {offsets = [0, 0], sizes = [1, 192], strides = [1, 1]} : vector<2x192xf32> to vector<1x192xf32>
    %16 = vector.extract_strided_slice %9 {offsets = [1, 0], sizes = [1, 192], strides = [1, 1]} : vector<2x192xf32> to vector<1x192xf32>
    %17 = vector.broadcast %13 : vector<16x1xf32> to vector<16x192xf32>
    %18 = vector.broadcast %15 : vector<1x192xf32> to vector<16x192xf32>
    %19 = arith.mulf %17, %18 : vector<16x192xf32>
    %20 = vector.broadcast %11 : vector<1x192xf32> to vector<16x192xf32>
    %21 = arith.addf %20, %19 : vector<16x192xf32>
    %22 = vector.broadcast %14 : vector<16x1xf32> to vector<16x192xf32>
    %23 = vector.broadcast %16 : vector<1x192xf32> to vector<16x192xf32>
    %24 = arith.mulf %22, %23 : vector<16x192xf32>
    %25 = arith.addf %21, %24 : vector<16x192xf32>
    %26 = vector.shape_cast %12 : vector<1x64xf32> to vector<1x64xf32>
    %27 = vector.broadcast %26 : vector<1x64xf32> to vector<2x64xf32>
    %cst = arith.constant 0.000000e+00 : f32
    %28 = vector.broadcast %cst : f32 to vector<2x64xf32>
    %cst_9 = arith.constant dense<0.000000e+00> : vector<2x192xf32>
    %29 = tpu.matmul %28, %10, %cst_9 {dimension_numbers = #tpu.dot_dimension_numbers<[1], [0], [0], [1], [0, 0, 1, 1], [], []>} : vector<2x64xf32>, vector<64x192xf32>, vector<2x192xf32> -> vector<2x192xf32>
    %30 = vector.extract_strided_slice %25 {offsets = [0, 0], sizes = [2, 192], strides = [1, 1]} : vector<16x192xf32> to vector<2x192xf32>
    %31 = vector.extract_strided_slice %30 {offsets = [0, 0], sizes = [2, 128], strides = [1, 1]} : vector<2x192xf32> to vector<2x128xf32>
    %32 = vector.extract_strided_slice %29 {offsets = [0, 0], sizes = [2, 128], strides = [1, 1]} : vector<2x192xf32> to vector<2x128xf32>
    %33 = arith.addf %31, %32 : vector<2x128xf32>
    %34 = arith.negf %33 : vector<2x128xf32>
    %35 = math.exp %34 : vector<2x128xf32>
    %cst_10 = arith.constant 1.000000e+00 : f32
    %36 = vector.broadcast %cst_10 : f32 to vector<2x128xf32>
    %37 = arith.addf %36, %35 : vector<2x128xf32>
    %38 = arith.divf %36, %37 : vector<2x128xf32>
    %39 = vector.extract_strided_slice %38 {offsets = [0, 0], sizes = [2, 64], strides = [1, 1]} : vector<2x128xf32> to vector<2x64xf32>
    %40 = vector.extract_strided_slice %38 {offsets = [0, 64], sizes = [2, 64], strides = [1, 1]} : vector<2x128xf32> to vector<2x64xf32>
    %41 = vector.extract_strided_slice %30 {offsets = [0, 128], sizes = [2, 64], strides = [1, 1]} : vector<2x192xf32> to vector<2x64xf32>
    %42 = vector.extract_strided_slice %29 {offsets = [0, 128], sizes = [2, 64], strides = [1, 1]} : vector<2x192xf32> to vector<2x64xf32>
    %43 = arith.addf %42, %27 : vector<2x64xf32>
    %44 = arith.mulf %39, %43 : vector<2x64xf32>
    %45 = arith.addf %41, %44 : vector<2x64xf32>
    %46 = math.tanh %45 : vector<2x64xf32>
    %cst_11 = arith.constant 1.000000e+00 : f32
    %47 = vector.broadcast %cst_11 : f32 to vector<2x64xf32>
    %48 = arith.subf %47, %40 : vector<2x64xf32>
    %49 = arith.mulf %48, %46 : vector<2x64xf32>
    %50 = arith.mulf %40, %28 : vector<2x64xf32>
    %51 = arith.addf %49, %50 : vector<2x64xf32>
    %52 = vector.extract_strided_slice %51 {offsets = [0, 0], sizes = [2, 32], strides = [1, 1]} : vector<2x64xf32> to vector<2x32xf32>
    %53 = vector.extract_strided_slice %51 {offsets = [0, 32], sizes = [2, 32], strides = [1, 1]} : vector<2x64xf32> to vector<2x32xf32>
    %cst_12 = arith.constant dense<0.000000e+00> : vector<2x192xf32>
    %54 = tpu.matmul %51, %10, %cst_12 {dimension_numbers = #tpu.dot_dimension_numbers<[1], [0], [0], [1], [0, 0, 1, 1], [], []>} : vector<2x64xf32>, vector<64x192xf32>, vector<2x192xf32> -> vector<2x192xf32>
    %55 = vector.extract_strided_slice %25 {offsets = [2, 0], sizes = [2, 192], strides = [1, 1]} : vector<16x192xf32> to vector<2x192xf32>
    %56 = vector.extract_strided_slice %55 {offsets = [0, 0], sizes = [2, 128], strides = [1, 1]} : vector<2x192xf32> to vector<2x128xf32>
    %57 = vector.extract_strided_slice %54 {offsets = [0, 0], sizes = [2, 128], strides = [1, 1]} : vector<2x192xf32> to vector<2x128xf32>
    %58 = arith.addf %56, %57 : vector<2x128xf32>
    %59 = arith.negf %58 : vector<2x128xf32>
    %60 = math.exp %59 : vector<2x128xf32>
    %cst_13 = arith.constant 1.000000e+00 : f32
    %61 = vector.broadcast %cst_13 : f32 to vector<2x128xf32>
    %62 = arith.addf %61, %60 : vector<2x128xf32>
    %63 = arith.divf %61, %62 : vector<2x128xf32>
    %64 = vector.extract_strided_slice %63 {offsets = [0, 0], sizes = [2, 64], strides = [1, 1]} : vector<2x128xf32> to vector<2x64xf32>
    %65 = vector.extract_strided_slice %63 {offsets = [0, 64], sizes = [2, 64], strides = [1, 1]} : vector<2x128xf32> to vector<2x64xf32>
    %66 = vector.extract_strided_slice %55 {offsets = [0, 128], sizes = [2, 64], strides = [1, 1]} : vector<2x192xf32> to vector<2x64xf32>
    %67 = vector.extract_strided_slice %54 {offsets = [0, 128], sizes = [2, 64], strides = [1, 1]} : vector<2x192xf32> to vector<2x64xf32>
    %68 = arith.addf %67, %27 : vector<2x64xf32>
    %69 = arith.mulf %64, %68 : vector<2x64xf32>
    %70 = arith.addf %66, %69 : vector<2x64xf32>
    %71 = math.tanh %70 : vector<2x64xf32>
    %cst_14 = arith.constant 1.000000e+00 : f32
    %72 = vector.broadcast %cst_14 : f32 to vector<2x64xf32>
    %73 = arith.subf %72, %65 : vector<2x64xf32>
    %74 = arith.mulf %73, %71 : vector<2x64xf32>
    %75 = arith.mulf %65, %51 : vector<2x64xf32>
    %76 = arith.addf %74, %75 : vector<2x64xf32>
    %77 = vector.extract_strided_slice %76 {offsets = [0, 0], sizes = [2, 32], strides = [1, 1]} : vector<2x64xf32> to vector<2x32xf32>
    %78 = vector.extract_strided_slice %76 {offsets = [0, 32], sizes = [2, 32], strides = [1, 1]} : vector<2x64xf32> to vector<2x32xf32>
    %cst_15 = arith.constant dense<0.000000e+00> : vector<2x192xf32>
    %79 = tpu.matmul %76, %10, %cst_15 {dimension_numbers = #tpu.dot_dimension_numbers<[1], [0], [0], [1], [0, 0, 1, 1], [], []>} : vector<2x64xf32>, vector<64x192xf32>, vector<2x192xf32> -> vector<2x192xf32>
    %80 = vector.extract_strided_slice %25 {offsets = [4, 0], sizes = [2, 192], strides = [1, 1]} : vector<16x192xf32> to vector<2x192xf32>
    %81 = vector.extract_strided_slice %80 {offsets = [0, 0], sizes = [2, 128], strides = [1, 1]} : vector<2x192xf32> to vector<2x128xf32>
    %82 = vector.extract_strided_slice %79 {offsets = [0, 0], sizes = [2, 128], strides = [1, 1]} : vector<2x192xf32> to vector<2x128xf32>
    %83 = arith.addf %81, %82 : vector<2x128xf32>
    %84 = arith.negf %83 : vector<2x128xf32>
    %85 = math.exp %84 : vector<2x128xf32>
    %cst_16 = arith.constant 1.000000e+00 : f32
    %86 = vector.broadcast %cst_16 : f32 to vector<2x128xf32>
    %87 = arith.addf %86, %85 : vector<2x128xf32>
    %88 = arith.divf %86, %87 : vector<2x128xf32>
    %89 = vector.extract_strided_slice %88 {offsets = [0, 0], sizes = [2, 64], strides = [1, 1]} : vector<2x128xf32> to vector<2x64xf32>
    %90 = vector.extract_strided_slice %88 {offsets = [0, 64], sizes = [2, 64], strides = [1, 1]} : vector<2x128xf32> to vector<2x64xf32>
    %91 = vector.extract_strided_slice %80 {offsets = [0, 128], sizes = [2, 64], strides = [1, 1]} : vector<2x192xf32> to vector<2x64xf32>
    %92 = vector.extract_strided_slice %79 {offsets = [0, 128], sizes = [2, 64], strides = [1, 1]} : vector<2x192xf32> to vector<2x64xf32>
    %93 = arith.addf %92, %27 : vector<2x64xf32>
    %94 = arith.mulf %89, %93 : vector<2x64xf32>
    %95 = arith.addf %91, %94 : vector<2x64xf32>
    %96 = math.tanh %95 : vector<2x64xf32>
    %cst_17 = arith.constant 1.000000e+00 : f32
    %97 = vector.broadcast %cst_17 : f32 to vector<2x64xf32>
    %98 = arith.subf %97, %90 : vector<2x64xf32>
    %99 = arith.mulf %98, %96 : vector<2x64xf32>
    %100 = arith.mulf %90, %76 : vector<2x64xf32>
    %101 = arith.addf %99, %100 : vector<2x64xf32>
    %102 = vector.extract_strided_slice %101 {offsets = [0, 0], sizes = [2, 32], strides = [1, 1]} : vector<2x64xf32> to vector<2x32xf32>
    %103 = vector.extract_strided_slice %101 {offsets = [0, 32], sizes = [2, 32], strides = [1, 1]} : vector<2x64xf32> to vector<2x32xf32>
    %cst_18 = arith.constant dense<0.000000e+00> : vector<2x192xf32>
    %104 = tpu.matmul %101, %10, %cst_18 {dimension_numbers = #tpu.dot_dimension_numbers<[1], [0], [0], [1], [0, 0, 1, 1], [], []>} : vector<2x64xf32>, vector<64x192xf32>, vector<2x192xf32> -> vector<2x192xf32>
    %105 = vector.extract_strided_slice %25 {offsets = [6, 0], sizes = [2, 192], strides = [1, 1]} : vector<16x192xf32> to vector<2x192xf32>
    %106 = vector.extract_strided_slice %105 {offsets = [0, 0], sizes = [2, 128], strides = [1, 1]} : vector<2x192xf32> to vector<2x128xf32>
    %107 = vector.extract_strided_slice %104 {offsets = [0, 0], sizes = [2, 128], strides = [1, 1]} : vector<2x192xf32> to vector<2x128xf32>
    %108 = arith.addf %106, %107 : vector<2x128xf32>
    %109 = arith.negf %108 : vector<2x128xf32>
    %110 = math.exp %109 : vector<2x128xf32>
    %cst_19 = arith.constant 1.000000e+00 : f32
    %111 = vector.broadcast %cst_19 : f32 to vector<2x128xf32>
    %112 = arith.addf %111, %110 : vector<2x128xf32>
    %113 = arith.divf %111, %112 : vector<2x128xf32>
    %114 = vector.extract_strided_slice %113 {offsets = [0, 0], sizes = [2, 64], strides = [1, 1]} : vector<2x128xf32> to vector<2x64xf32>
    %115 = vector.extract_strided_slice %113 {offsets = [0, 64], sizes = [2, 64], strides = [1, 1]} : vector<2x128xf32> to vector<2x64xf32>
    %116 = vector.extract_strided_slice %105 {offsets = [0, 128], sizes = [2, 64], strides = [1, 1]} : vector<2x192xf32> to vector<2x64xf32>
    %117 = vector.extract_strided_slice %104 {offsets = [0, 128], sizes = [2, 64], strides = [1, 1]} : vector<2x192xf32> to vector<2x64xf32>
    %118 = arith.addf %117, %27 : vector<2x64xf32>
    %119 = arith.mulf %114, %118 : vector<2x64xf32>
    %120 = arith.addf %116, %119 : vector<2x64xf32>
    %121 = math.tanh %120 : vector<2x64xf32>
    %cst_20 = arith.constant 1.000000e+00 : f32
    %122 = vector.broadcast %cst_20 : f32 to vector<2x64xf32>
    %123 = arith.subf %122, %115 : vector<2x64xf32>
    %124 = arith.mulf %123, %121 : vector<2x64xf32>
    %125 = arith.mulf %115, %101 : vector<2x64xf32>
    %126 = arith.addf %124, %125 : vector<2x64xf32>
    %127 = vector.extract_strided_slice %126 {offsets = [0, 0], sizes = [2, 32], strides = [1, 1]} : vector<2x64xf32> to vector<2x32xf32>
    %128 = vector.extract_strided_slice %126 {offsets = [0, 32], sizes = [2, 32], strides = [1, 1]} : vector<2x64xf32> to vector<2x32xf32>
    %cst_21 = arith.constant dense<0.000000e+00> : vector<2x192xf32>
    %129 = tpu.matmul %126, %10, %cst_21 {dimension_numbers = #tpu.dot_dimension_numbers<[1], [0], [0], [1], [0, 0, 1, 1], [], []>} : vector<2x64xf32>, vector<64x192xf32>, vector<2x192xf32> -> vector<2x192xf32>
    %130 = vector.extract_strided_slice %25 {offsets = [8, 0], sizes = [2, 192], strides = [1, 1]} : vector<16x192xf32> to vector<2x192xf32>
    %131 = vector.extract_strided_slice %130 {offsets = [0, 0], sizes = [2, 128], strides = [1, 1]} : vector<2x192xf32> to vector<2x128xf32>
    %132 = vector.extract_strided_slice %129 {offsets = [0, 0], sizes = [2, 128], strides = [1, 1]} : vector<2x192xf32> to vector<2x128xf32>
    %133 = arith.addf %131, %132 : vector<2x128xf32>
    %134 = arith.negf %133 : vector<2x128xf32>
    %135 = math.exp %134 : vector<2x128xf32>
    %cst_22 = arith.constant 1.000000e+00 : f32
    %136 = vector.broadcast %cst_22 : f32 to vector<2x128xf32>
    %137 = arith.addf %136, %135 : vector<2x128xf32>
    %138 = arith.divf %136, %137 : vector<2x128xf32>
    %139 = vector.extract_strided_slice %138 {offsets = [0, 0], sizes = [2, 64], strides = [1, 1]} : vector<2x128xf32> to vector<2x64xf32>
    %140 = vector.extract_strided_slice %138 {offsets = [0, 64], sizes = [2, 64], strides = [1, 1]} : vector<2x128xf32> to vector<2x64xf32>
    %141 = vector.extract_strided_slice %130 {offsets = [0, 128], sizes = [2, 64], strides = [1, 1]} : vector<2x192xf32> to vector<2x64xf32>
    %142 = vector.extract_strided_slice %129 {offsets = [0, 128], sizes = [2, 64], strides = [1, 1]} : vector<2x192xf32> to vector<2x64xf32>
    %143 = arith.addf %142, %27 : vector<2x64xf32>
    %144 = arith.mulf %139, %143 : vector<2x64xf32>
    %145 = arith.addf %141, %144 : vector<2x64xf32>
    %146 = math.tanh %145 : vector<2x64xf32>
    %cst_23 = arith.constant 1.000000e+00 : f32
    %147 = vector.broadcast %cst_23 : f32 to vector<2x64xf32>
    %148 = arith.subf %147, %140 : vector<2x64xf32>
    %149 = arith.mulf %148, %146 : vector<2x64xf32>
    %150 = arith.mulf %140, %126 : vector<2x64xf32>
    %151 = arith.addf %149, %150 : vector<2x64xf32>
    %152 = vector.extract_strided_slice %151 {offsets = [0, 0], sizes = [2, 32], strides = [1, 1]} : vector<2x64xf32> to vector<2x32xf32>
    %153 = vector.extract_strided_slice %151 {offsets = [0, 32], sizes = [2, 32], strides = [1, 1]} : vector<2x64xf32> to vector<2x32xf32>
    %cst_24 = arith.constant dense<0.000000e+00> : vector<2x192xf32>
    %154 = tpu.matmul %151, %10, %cst_24 {dimension_numbers = #tpu.dot_dimension_numbers<[1], [0], [0], [1], [0, 0, 1, 1], [], []>} : vector<2x64xf32>, vector<64x192xf32>, vector<2x192xf32> -> vector<2x192xf32>
    %155 = vector.extract_strided_slice %25 {offsets = [10, 0], sizes = [2, 192], strides = [1, 1]} : vector<16x192xf32> to vector<2x192xf32>
    %156 = vector.extract_strided_slice %155 {offsets = [0, 0], sizes = [2, 128], strides = [1, 1]} : vector<2x192xf32> to vector<2x128xf32>
    %157 = vector.extract_strided_slice %154 {offsets = [0, 0], sizes = [2, 128], strides = [1, 1]} : vector<2x192xf32> to vector<2x128xf32>
    %158 = arith.addf %156, %157 : vector<2x128xf32>
    %159 = arith.negf %158 : vector<2x128xf32>
    %160 = math.exp %159 : vector<2x128xf32>
    %cst_25 = arith.constant 1.000000e+00 : f32
    %161 = vector.broadcast %cst_25 : f32 to vector<2x128xf32>
    %162 = arith.addf %161, %160 : vector<2x128xf32>
    %163 = arith.divf %161, %162 : vector<2x128xf32>
    %164 = vector.extract_strided_slice %163 {offsets = [0, 0], sizes = [2, 64], strides = [1, 1]} : vector<2x128xf32> to vector<2x64xf32>
    %165 = vector.extract_strided_slice %163 {offsets = [0, 64], sizes = [2, 64], strides = [1, 1]} : vector<2x128xf32> to vector<2x64xf32>
    %166 = vector.extract_strided_slice %155 {offsets = [0, 128], sizes = [2, 64], strides = [1, 1]} : vector<2x192xf32> to vector<2x64xf32>
    %167 = vector.extract_strided_slice %154 {offsets = [0, 128], sizes = [2, 64], strides = [1, 1]} : vector<2x192xf32> to vector<2x64xf32>
    %168 = arith.addf %167, %27 : vector<2x64xf32>
    %169 = arith.mulf %164, %168 : vector<2x64xf32>
    %170 = arith.addf %166, %169 : vector<2x64xf32>
    %171 = math.tanh %170 : vector<2x64xf32>
    %cst_26 = arith.constant 1.000000e+00 : f32
    %172 = vector.broadcast %cst_26 : f32 to vector<2x64xf32>
    %173 = arith.subf %172, %165 : vector<2x64xf32>
    %174 = arith.mulf %173, %171 : vector<2x64xf32>
    %175 = arith.mulf %165, %151 : vector<2x64xf32>
    %176 = arith.addf %174, %175 : vector<2x64xf32>
    %177 = vector.extract_strided_slice %176 {offsets = [0, 0], sizes = [2, 32], strides = [1, 1]} : vector<2x64xf32> to vector<2x32xf32>
    %178 = vector.extract_strided_slice %176 {offsets = [0, 32], sizes = [2, 32], strides = [1, 1]} : vector<2x64xf32> to vector<2x32xf32>
    %cst_27 = arith.constant dense<0.000000e+00> : vector<2x192xf32>
    %179 = tpu.matmul %176, %10, %cst_27 {dimension_numbers = #tpu.dot_dimension_numbers<[1], [0], [0], [1], [0, 0, 1, 1], [], []>} : vector<2x64xf32>, vector<64x192xf32>, vector<2x192xf32> -> vector<2x192xf32>
    %180 = vector.extract_strided_slice %25 {offsets = [12, 0], sizes = [2, 192], strides = [1, 1]} : vector<16x192xf32> to vector<2x192xf32>
    %181 = vector.extract_strided_slice %180 {offsets = [0, 0], sizes = [2, 128], strides = [1, 1]} : vector<2x192xf32> to vector<2x128xf32>
    %182 = vector.extract_strided_slice %179 {offsets = [0, 0], sizes = [2, 128], strides = [1, 1]} : vector<2x192xf32> to vector<2x128xf32>
    %183 = arith.addf %181, %182 : vector<2x128xf32>
    %184 = arith.negf %183 : vector<2x128xf32>
    %185 = math.exp %184 : vector<2x128xf32>
    %cst_28 = arith.constant 1.000000e+00 : f32
    %186 = vector.broadcast %cst_28 : f32 to vector<2x128xf32>
    %187 = arith.addf %186, %185 : vector<2x128xf32>
    %188 = arith.divf %186, %187 : vector<2x128xf32>
    %189 = vector.extract_strided_slice %188 {offsets = [0, 0], sizes = [2, 64], strides = [1, 1]} : vector<2x128xf32> to vector<2x64xf32>
    %190 = vector.extract_strided_slice %188 {offsets = [0, 64], sizes = [2, 64], strides = [1, 1]} : vector<2x128xf32> to vector<2x64xf32>
    %191 = vector.extract_strided_slice %180 {offsets = [0, 128], sizes = [2, 64], strides = [1, 1]} : vector<2x192xf32> to vector<2x64xf32>
    %192 = vector.extract_strided_slice %179 {offsets = [0, 128], sizes = [2, 64], strides = [1, 1]} : vector<2x192xf32> to vector<2x64xf32>
    %193 = arith.addf %192, %27 : vector<2x64xf32>
    %194 = arith.mulf %189, %193 : vector<2x64xf32>
    %195 = arith.addf %191, %194 : vector<2x64xf32>
    %196 = math.tanh %195 : vector<2x64xf32>
    %cst_29 = arith.constant 1.000000e+00 : f32
    %197 = vector.broadcast %cst_29 : f32 to vector<2x64xf32>
    %198 = arith.subf %197, %190 : vector<2x64xf32>
    %199 = arith.mulf %198, %196 : vector<2x64xf32>
    %200 = arith.mulf %190, %176 : vector<2x64xf32>
    %201 = arith.addf %199, %200 : vector<2x64xf32>
    %202 = vector.extract_strided_slice %201 {offsets = [0, 0], sizes = [2, 32], strides = [1, 1]} : vector<2x64xf32> to vector<2x32xf32>
    %203 = vector.extract_strided_slice %201 {offsets = [0, 32], sizes = [2, 32], strides = [1, 1]} : vector<2x64xf32> to vector<2x32xf32>
    %cst_30 = arith.constant dense<0.000000e+00> : vector<2x192xf32>
    %204 = tpu.matmul %201, %10, %cst_30 {dimension_numbers = #tpu.dot_dimension_numbers<[1], [0], [0], [1], [0, 0, 1, 1], [], []>} : vector<2x64xf32>, vector<64x192xf32>, vector<2x192xf32> -> vector<2x192xf32>
    %205 = vector.extract_strided_slice %25 {offsets = [14, 0], sizes = [2, 192], strides = [1, 1]} : vector<16x192xf32> to vector<2x192xf32>
    %206 = vector.extract_strided_slice %205 {offsets = [0, 0], sizes = [2, 128], strides = [1, 1]} : vector<2x192xf32> to vector<2x128xf32>
    %207 = vector.extract_strided_slice %204 {offsets = [0, 0], sizes = [2, 128], strides = [1, 1]} : vector<2x192xf32> to vector<2x128xf32>
    %208 = arith.addf %206, %207 : vector<2x128xf32>
    %209 = arith.negf %208 : vector<2x128xf32>
    %210 = math.exp %209 : vector<2x128xf32>
    %cst_31 = arith.constant 1.000000e+00 : f32
    %211 = vector.broadcast %cst_31 : f32 to vector<2x128xf32>
    %212 = arith.addf %211, %210 : vector<2x128xf32>
    %213 = arith.divf %211, %212 : vector<2x128xf32>
    %214 = vector.extract_strided_slice %213 {offsets = [0, 0], sizes = [2, 64], strides = [1, 1]} : vector<2x128xf32> to vector<2x64xf32>
    %215 = vector.extract_strided_slice %213 {offsets = [0, 64], sizes = [2, 64], strides = [1, 1]} : vector<2x128xf32> to vector<2x64xf32>
    %216 = vector.extract_strided_slice %205 {offsets = [0, 128], sizes = [2, 64], strides = [1, 1]} : vector<2x192xf32> to vector<2x64xf32>
    %217 = vector.extract_strided_slice %204 {offsets = [0, 128], sizes = [2, 64], strides = [1, 1]} : vector<2x192xf32> to vector<2x64xf32>
    %218 = arith.addf %217, %27 : vector<2x64xf32>
    %219 = arith.mulf %214, %218 : vector<2x64xf32>
    %220 = arith.addf %216, %219 : vector<2x64xf32>
    %221 = math.tanh %220 : vector<2x64xf32>
    %cst_32 = arith.constant 1.000000e+00 : f32
    %222 = vector.broadcast %cst_32 : f32 to vector<2x64xf32>
    %223 = arith.subf %222, %215 : vector<2x64xf32>
    %224 = arith.mulf %223, %221 : vector<2x64xf32>
    %225 = arith.mulf %215, %201 : vector<2x64xf32>
    %226 = arith.addf %224, %225 : vector<2x64xf32>
    %227 = vector.extract_strided_slice %226 {offsets = [0, 0], sizes = [2, 32], strides = [1, 1]} : vector<2x64xf32> to vector<2x32xf32>
    %228 = vector.extract_strided_slice %226 {offsets = [0, 32], sizes = [2, 32], strides = [1, 1]} : vector<2x64xf32> to vector<2x32xf32>
    %229 = tpu.concatenate %52, %228 in 1 : vector<2x32xf32>, vector<2x32xf32> -> vector<2x64xf32>
    %230 = tpu.concatenate %77, %203 in 1 : vector<2x32xf32>, vector<2x32xf32> -> vector<2x64xf32>
    %231 = tpu.concatenate %102, %178 in 1 : vector<2x32xf32>, vector<2x32xf32> -> vector<2x64xf32>
    %232 = tpu.concatenate %127, %153 in 1 : vector<2x32xf32>, vector<2x32xf32> -> vector<2x64xf32>
    %233 = tpu.concatenate %152, %128 in 1 : vector<2x32xf32>, vector<2x32xf32> -> vector<2x64xf32>
    %234 = tpu.concatenate %177, %103 in 1 : vector<2x32xf32>, vector<2x32xf32> -> vector<2x64xf32>
    %235 = tpu.concatenate %202, %78 in 1 : vector<2x32xf32>, vector<2x32xf32> -> vector<2x64xf32>
    %236 = tpu.concatenate %227, %53 in 1 : vector<2x32xf32>, vector<2x32xf32> -> vector<2x64xf32>
    %c0_33 = arith.constant 0 : index
    %c0_34 = arith.constant 0 : index
    %237 = vector.load %arg5[%c0_33, %c0_34] : memref<128x192xf32, #tpu.memory_space<vmem>>, vector<128x192xf32>
    %c0_35 = arith.constant 0 : index
    %c0_36 = arith.constant 0 : index
    %238 = vector.load %arg6[%c0_35, %c0_36] : memref<64x192xf32, #tpu.memory_space<vmem>>, vector<64x192xf32>
    %c0_37 = arith.constant 0 : index
    %c0_38 = arith.constant 0 : index
    %239 = vector.load %arg7[%c0_37, %c0_38] : memref<1x192xf32, #tpu.memory_space<vmem>>, vector<1x192xf32>
    %c0_39 = arith.constant 0 : index
    %c0_40 = arith.constant 0 : index
    %240 = vector.load %arg8[%c0_39, %c0_40] : memref<1x64xf32, #tpu.memory_space<vmem>>, vector<1x64xf32>
    %241 = tpu.concatenate %229, %230, %231, %232, %233, %234, %235, %236 in 0 : vector<2x64xf32>, vector<2x64xf32>, vector<2x64xf32>, vector<2x64xf32>, vector<2x64xf32>, vector<2x64xf32>, vector<2x64xf32>, vector<2x64xf32> -> vector<16x64xf32>
    %242 = tpu.concatenate %236, %235, %234, %233, %232, %231, %230, %229 in 0 : vector<2x64xf32>, vector<2x64xf32>, vector<2x64xf32>, vector<2x64xf32>, vector<2x64xf32>, vector<2x64xf32>, vector<2x64xf32>, vector<2x64xf32> -> vector<16x64xf32>
    %243 = vector.extract_strided_slice %237 {offsets = [0, 0], sizes = [64, 192], strides = [1, 1]} : vector<128x192xf32> to vector<64x192xf32>
    %244 = vector.extract_strided_slice %237 {offsets = [64, 0], sizes = [64, 192], strides = [1, 1]} : vector<128x192xf32> to vector<64x192xf32>
    %cst_41 = arith.constant dense<0.000000e+00> : vector<16x192xf32>
    %245 = tpu.matmul %241, %243, %cst_41 {dimension_numbers = #tpu.dot_dimension_numbers<[1], [0], [0], [1], [0, 0, 1, 1], [], []>} : vector<16x64xf32>, vector<64x192xf32>, vector<16x192xf32> -> vector<16x192xf32>
    %cst_42 = arith.constant dense<0.000000e+00> : vector<16x192xf32>
    %246 = tpu.matmul %242, %244, %cst_42 {dimension_numbers = #tpu.dot_dimension_numbers<[1], [0], [0], [1], [0, 0, 1, 1], [], []>} : vector<16x64xf32>, vector<64x192xf32>, vector<16x192xf32> -> vector<16x192xf32>
    %247 = arith.addf %245, %246 : vector<16x192xf32>
    %248 = vector.broadcast %239 : vector<1x192xf32> to vector<16x192xf32>
    %249 = arith.addf %247, %248 : vector<16x192xf32>
    %250 = vector.shape_cast %240 : vector<1x64xf32> to vector<1x64xf32>
    %251 = vector.broadcast %250 : vector<1x64xf32> to vector<2x64xf32>
    %cst_43 = arith.constant 0.000000e+00 : f32
    %252 = vector.broadcast %cst_43 : f32 to vector<2x64xf32>
    %cst_44 = arith.constant dense<0.000000e+00> : vector<2x192xf32>
    %253 = tpu.matmul %252, %238, %cst_44 {dimension_numbers = #tpu.dot_dimension_numbers<[1], [0], [0], [1], [0, 0, 1, 1], [], []>} : vector<2x64xf32>, vector<64x192xf32>, vector<2x192xf32> -> vector<2x192xf32>
    %254 = vector.extract_strided_slice %249 {offsets = [0, 0], sizes = [2, 192], strides = [1, 1]} : vector<16x192xf32> to vector<2x192xf32>
    %255 = vector.extract_strided_slice %254 {offsets = [0, 0], sizes = [2, 128], strides = [1, 1]} : vector<2x192xf32> to vector<2x128xf32>
    %256 = vector.extract_strided_slice %253 {offsets = [0, 0], sizes = [2, 128], strides = [1, 1]} : vector<2x192xf32> to vector<2x128xf32>
    %257 = arith.addf %255, %256 : vector<2x128xf32>
    %258 = arith.negf %257 : vector<2x128xf32>
    %259 = math.exp %258 : vector<2x128xf32>
    %cst_45 = arith.constant 1.000000e+00 : f32
    %260 = vector.broadcast %cst_45 : f32 to vector<2x128xf32>
    %261 = arith.addf %260, %259 : vector<2x128xf32>
    %262 = arith.divf %260, %261 : vector<2x128xf32>
    %263 = vector.extract_strided_slice %262 {offsets = [0, 0], sizes = [2, 64], strides = [1, 1]} : vector<2x128xf32> to vector<2x64xf32>
    %264 = vector.extract_strided_slice %262 {offsets = [0, 64], sizes = [2, 64], strides = [1, 1]} : vector<2x128xf32> to vector<2x64xf32>
    %265 = vector.extract_strided_slice %254 {offsets = [0, 128], sizes = [2, 64], strides = [1, 1]} : vector<2x192xf32> to vector<2x64xf32>
    %266 = vector.extract_strided_slice %253 {offsets = [0, 128], sizes = [2, 64], strides = [1, 1]} : vector<2x192xf32> to vector<2x64xf32>
    %267 = arith.addf %266, %251 : vector<2x64xf32>
    %268 = arith.mulf %263, %267 : vector<2x64xf32>
    %269 = arith.addf %265, %268 : vector<2x64xf32>
    %270 = math.tanh %269 : vector<2x64xf32>
    %cst_46 = arith.constant 1.000000e+00 : f32
    %271 = vector.broadcast %cst_46 : f32 to vector<2x64xf32>
    %272 = arith.subf %271, %264 : vector<2x64xf32>
    %273 = arith.mulf %272, %270 : vector<2x64xf32>
    %274 = arith.mulf %264, %252 : vector<2x64xf32>
    %275 = arith.addf %273, %274 : vector<2x64xf32>
    %276 = vector.extract_strided_slice %275 {offsets = [0, 0], sizes = [2, 32], strides = [1, 1]} : vector<2x64xf32> to vector<2x32xf32>
    %277 = vector.extract_strided_slice %275 {offsets = [0, 32], sizes = [2, 32], strides = [1, 1]} : vector<2x64xf32> to vector<2x32xf32>
    %cst_47 = arith.constant dense<0.000000e+00> : vector<2x192xf32>
    %278 = tpu.matmul %275, %238, %cst_47 {dimension_numbers = #tpu.dot_dimension_numbers<[1], [0], [0], [1], [0, 0, 1, 1], [], []>} : vector<2x64xf32>, vector<64x192xf32>, vector<2x192xf32> -> vector<2x192xf32>
    %279 = vector.extract_strided_slice %249 {offsets = [2, 0], sizes = [2, 192], strides = [1, 1]} : vector<16x192xf32> to vector<2x192xf32>
    %280 = vector.extract_strided_slice %279 {offsets = [0, 0], sizes = [2, 128], strides = [1, 1]} : vector<2x192xf32> to vector<2x128xf32>
    %281 = vector.extract_strided_slice %278 {offsets = [0, 0], sizes = [2, 128], strides = [1, 1]} : vector<2x192xf32> to vector<2x128xf32>
    %282 = arith.addf %280, %281 : vector<2x128xf32>
    %283 = arith.negf %282 : vector<2x128xf32>
    %284 = math.exp %283 : vector<2x128xf32>
    %cst_48 = arith.constant 1.000000e+00 : f32
    %285 = vector.broadcast %cst_48 : f32 to vector<2x128xf32>
    %286 = arith.addf %285, %284 : vector<2x128xf32>
    %287 = arith.divf %285, %286 : vector<2x128xf32>
    %288 = vector.extract_strided_slice %287 {offsets = [0, 0], sizes = [2, 64], strides = [1, 1]} : vector<2x128xf32> to vector<2x64xf32>
    %289 = vector.extract_strided_slice %287 {offsets = [0, 64], sizes = [2, 64], strides = [1, 1]} : vector<2x128xf32> to vector<2x64xf32>
    %290 = vector.extract_strided_slice %279 {offsets = [0, 128], sizes = [2, 64], strides = [1, 1]} : vector<2x192xf32> to vector<2x64xf32>
    %291 = vector.extract_strided_slice %278 {offsets = [0, 128], sizes = [2, 64], strides = [1, 1]} : vector<2x192xf32> to vector<2x64xf32>
    %292 = arith.addf %291, %251 : vector<2x64xf32>
    %293 = arith.mulf %288, %292 : vector<2x64xf32>
    %294 = arith.addf %290, %293 : vector<2x64xf32>
    %295 = math.tanh %294 : vector<2x64xf32>
    %cst_49 = arith.constant 1.000000e+00 : f32
    %296 = vector.broadcast %cst_49 : f32 to vector<2x64xf32>
    %297 = arith.subf %296, %289 : vector<2x64xf32>
    %298 = arith.mulf %297, %295 : vector<2x64xf32>
    %299 = arith.mulf %289, %275 : vector<2x64xf32>
    %300 = arith.addf %298, %299 : vector<2x64xf32>
    %301 = vector.extract_strided_slice %300 {offsets = [0, 0], sizes = [2, 32], strides = [1, 1]} : vector<2x64xf32> to vector<2x32xf32>
    %302 = vector.extract_strided_slice %300 {offsets = [0, 32], sizes = [2, 32], strides = [1, 1]} : vector<2x64xf32> to vector<2x32xf32>
    %cst_50 = arith.constant dense<0.000000e+00> : vector<2x192xf32>
    %303 = tpu.matmul %300, %238, %cst_50 {dimension_numbers = #tpu.dot_dimension_numbers<[1], [0], [0], [1], [0, 0, 1, 1], [], []>} : vector<2x64xf32>, vector<64x192xf32>, vector<2x192xf32> -> vector<2x192xf32>
    %304 = vector.extract_strided_slice %249 {offsets = [4, 0], sizes = [2, 192], strides = [1, 1]} : vector<16x192xf32> to vector<2x192xf32>
    %305 = vector.extract_strided_slice %304 {offsets = [0, 0], sizes = [2, 128], strides = [1, 1]} : vector<2x192xf32> to vector<2x128xf32>
    %306 = vector.extract_strided_slice %303 {offsets = [0, 0], sizes = [2, 128], strides = [1, 1]} : vector<2x192xf32> to vector<2x128xf32>
    %307 = arith.addf %305, %306 : vector<2x128xf32>
    %308 = arith.negf %307 : vector<2x128xf32>
    %309 = math.exp %308 : vector<2x128xf32>
    %cst_51 = arith.constant 1.000000e+00 : f32
    %310 = vector.broadcast %cst_51 : f32 to vector<2x128xf32>
    %311 = arith.addf %310, %309 : vector<2x128xf32>
    %312 = arith.divf %310, %311 : vector<2x128xf32>
    %313 = vector.extract_strided_slice %312 {offsets = [0, 0], sizes = [2, 64], strides = [1, 1]} : vector<2x128xf32> to vector<2x64xf32>
    %314 = vector.extract_strided_slice %312 {offsets = [0, 64], sizes = [2, 64], strides = [1, 1]} : vector<2x128xf32> to vector<2x64xf32>
    %315 = vector.extract_strided_slice %304 {offsets = [0, 128], sizes = [2, 64], strides = [1, 1]} : vector<2x192xf32> to vector<2x64xf32>
    %316 = vector.extract_strided_slice %303 {offsets = [0, 128], sizes = [2, 64], strides = [1, 1]} : vector<2x192xf32> to vector<2x64xf32>
    %317 = arith.addf %316, %251 : vector<2x64xf32>
    %318 = arith.mulf %313, %317 : vector<2x64xf32>
    %319 = arith.addf %315, %318 : vector<2x64xf32>
    %320 = math.tanh %319 : vector<2x64xf32>
    %cst_52 = arith.constant 1.000000e+00 : f32
    %321 = vector.broadcast %cst_52 : f32 to vector<2x64xf32>
    %322 = arith.subf %321, %314 : vector<2x64xf32>
    %323 = arith.mulf %322, %320 : vector<2x64xf32>
    %324 = arith.mulf %314, %300 : vector<2x64xf32>
    %325 = arith.addf %323, %324 : vector<2x64xf32>
    %326 = vector.extract_strided_slice %325 {offsets = [0, 0], sizes = [2, 32], strides = [1, 1]} : vector<2x64xf32> to vector<2x32xf32>
    %327 = vector.extract_strided_slice %325 {offsets = [0, 32], sizes = [2, 32], strides = [1, 1]} : vector<2x64xf32> to vector<2x32xf32>
    %cst_53 = arith.constant dense<0.000000e+00> : vector<2x192xf32>
    %328 = tpu.matmul %325, %238, %cst_53 {dimension_numbers = #tpu.dot_dimension_numbers<[1], [0], [0], [1], [0, 0, 1, 1], [], []>} : vector<2x64xf32>, vector<64x192xf32>, vector<2x192xf32> -> vector<2x192xf32>
    %329 = vector.extract_strided_slice %249 {offsets = [6, 0], sizes = [2, 192], strides = [1, 1]} : vector<16x192xf32> to vector<2x192xf32>
    %330 = vector.extract_strided_slice %329 {offsets = [0, 0], sizes = [2, 128], strides = [1, 1]} : vector<2x192xf32> to vector<2x128xf32>
    %331 = vector.extract_strided_slice %328 {offsets = [0, 0], sizes = [2, 128], strides = [1, 1]} : vector<2x192xf32> to vector<2x128xf32>
    %332 = arith.addf %330, %331 : vector<2x128xf32>
    %333 = arith.negf %332 : vector<2x128xf32>
    %334 = math.exp %333 : vector<2x128xf32>
    %cst_54 = arith.constant 1.000000e+00 : f32
    %335 = vector.broadcast %cst_54 : f32 to vector<2x128xf32>
    %336 = arith.addf %335, %334 : vector<2x128xf32>
    %337 = arith.divf %335, %336 : vector<2x128xf32>
    %338 = vector.extract_strided_slice %337 {offsets = [0, 0], sizes = [2, 64], strides = [1, 1]} : vector<2x128xf32> to vector<2x64xf32>
    %339 = vector.extract_strided_slice %337 {offsets = [0, 64], sizes = [2, 64], strides = [1, 1]} : vector<2x128xf32> to vector<2x64xf32>
    %340 = vector.extract_strided_slice %329 {offsets = [0, 128], sizes = [2, 64], strides = [1, 1]} : vector<2x192xf32> to vector<2x64xf32>
    %341 = vector.extract_strided_slice %328 {offsets = [0, 128], sizes = [2, 64], strides = [1, 1]} : vector<2x192xf32> to vector<2x64xf32>
    %342 = arith.addf %341, %251 : vector<2x64xf32>
    %343 = arith.mulf %338, %342 : vector<2x64xf32>
    %344 = arith.addf %340, %343 : vector<2x64xf32>
    %345 = math.tanh %344 : vector<2x64xf32>
    %cst_55 = arith.constant 1.000000e+00 : f32
    %346 = vector.broadcast %cst_55 : f32 to vector<2x64xf32>
    %347 = arith.subf %346, %339 : vector<2x64xf32>
    %348 = arith.mulf %347, %345 : vector<2x64xf32>
    %349 = arith.mulf %339, %325 : vector<2x64xf32>
    %350 = arith.addf %348, %349 : vector<2x64xf32>
    %351 = vector.extract_strided_slice %350 {offsets = [0, 0], sizes = [2, 32], strides = [1, 1]} : vector<2x64xf32> to vector<2x32xf32>
    %352 = vector.extract_strided_slice %350 {offsets = [0, 32], sizes = [2, 32], strides = [1, 1]} : vector<2x64xf32> to vector<2x32xf32>
    %cst_56 = arith.constant dense<0.000000e+00> : vector<2x192xf32>
    %353 = tpu.matmul %350, %238, %cst_56 {dimension_numbers = #tpu.dot_dimension_numbers<[1], [0], [0], [1], [0, 0, 1, 1], [], []>} : vector<2x64xf32>, vector<64x192xf32>, vector<2x192xf32> -> vector<2x192xf32>
    %354 = vector.extract_strided_slice %249 {offsets = [8, 0], sizes = [2, 192], strides = [1, 1]} : vector<16x192xf32> to vector<2x192xf32>
    %355 = vector.extract_strided_slice %354 {offsets = [0, 0], sizes = [2, 128], strides = [1, 1]} : vector<2x192xf32> to vector<2x128xf32>
    %356 = vector.extract_strided_slice %353 {offsets = [0, 0], sizes = [2, 128], strides = [1, 1]} : vector<2x192xf32> to vector<2x128xf32>
    %357 = arith.addf %355, %356 : vector<2x128xf32>
    %358 = arith.negf %357 : vector<2x128xf32>
    %359 = math.exp %358 : vector<2x128xf32>
    %cst_57 = arith.constant 1.000000e+00 : f32
    %360 = vector.broadcast %cst_57 : f32 to vector<2x128xf32>
    %361 = arith.addf %360, %359 : vector<2x128xf32>
    %362 = arith.divf %360, %361 : vector<2x128xf32>
    %363 = vector.extract_strided_slice %362 {offsets = [0, 0], sizes = [2, 64], strides = [1, 1]} : vector<2x128xf32> to vector<2x64xf32>
    %364 = vector.extract_strided_slice %362 {offsets = [0, 64], sizes = [2, 64], strides = [1, 1]} : vector<2x128xf32> to vector<2x64xf32>
    %365 = vector.extract_strided_slice %354 {offsets = [0, 128], sizes = [2, 64], strides = [1, 1]} : vector<2x192xf32> to vector<2x64xf32>
    %366 = vector.extract_strided_slice %353 {offsets = [0, 128], sizes = [2, 64], strides = [1, 1]} : vector<2x192xf32> to vector<2x64xf32>
    %367 = arith.addf %366, %251 : vector<2x64xf32>
    %368 = arith.mulf %363, %367 : vector<2x64xf32>
    %369 = arith.addf %365, %368 : vector<2x64xf32>
    %370 = math.tanh %369 : vector<2x64xf32>
    %cst_58 = arith.constant 1.000000e+00 : f32
    %371 = vector.broadcast %cst_58 : f32 to vector<2x64xf32>
    %372 = arith.subf %371, %364 : vector<2x64xf32>
    %373 = arith.mulf %372, %370 : vector<2x64xf32>
    %374 = arith.mulf %364, %350 : vector<2x64xf32>
    %375 = arith.addf %373, %374 : vector<2x64xf32>
    %376 = vector.extract_strided_slice %375 {offsets = [0, 0], sizes = [2, 32], strides = [1, 1]} : vector<2x64xf32> to vector<2x32xf32>
    %377 = vector.extract_strided_slice %375 {offsets = [0, 32], sizes = [2, 32], strides = [1, 1]} : vector<2x64xf32> to vector<2x32xf32>
    %cst_59 = arith.constant dense<0.000000e+00> : vector<2x192xf32>
    %378 = tpu.matmul %375, %238, %cst_59 {dimension_numbers = #tpu.dot_dimension_numbers<[1], [0], [0], [1], [0, 0, 1, 1], [], []>} : vector<2x64xf32>, vector<64x192xf32>, vector<2x192xf32> -> vector<2x192xf32>
    %379 = vector.extract_strided_slice %249 {offsets = [10, 0], sizes = [2, 192], strides = [1, 1]} : vector<16x192xf32> to vector<2x192xf32>
    %380 = vector.extract_strided_slice %379 {offsets = [0, 0], sizes = [2, 128], strides = [1, 1]} : vector<2x192xf32> to vector<2x128xf32>
    %381 = vector.extract_strided_slice %378 {offsets = [0, 0], sizes = [2, 128], strides = [1, 1]} : vector<2x192xf32> to vector<2x128xf32>
    %382 = arith.addf %380, %381 : vector<2x128xf32>
    %383 = arith.negf %382 : vector<2x128xf32>
    %384 = math.exp %383 : vector<2x128xf32>
    %cst_60 = arith.constant 1.000000e+00 : f32
    %385 = vector.broadcast %cst_60 : f32 to vector<2x128xf32>
    %386 = arith.addf %385, %384 : vector<2x128xf32>
    %387 = arith.divf %385, %386 : vector<2x128xf32>
    %388 = vector.extract_strided_slice %387 {offsets = [0, 0], sizes = [2, 64], strides = [1, 1]} : vector<2x128xf32> to vector<2x64xf32>
    %389 = vector.extract_strided_slice %387 {offsets = [0, 64], sizes = [2, 64], strides = [1, 1]} : vector<2x128xf32> to vector<2x64xf32>
    %390 = vector.extract_strided_slice %379 {offsets = [0, 128], sizes = [2, 64], strides = [1, 1]} : vector<2x192xf32> to vector<2x64xf32>
    %391 = vector.extract_strided_slice %378 {offsets = [0, 128], sizes = [2, 64], strides = [1, 1]} : vector<2x192xf32> to vector<2x64xf32>
    %392 = arith.addf %391, %251 : vector<2x64xf32>
    %393 = arith.mulf %388, %392 : vector<2x64xf32>
    %394 = arith.addf %390, %393 : vector<2x64xf32>
    %395 = math.tanh %394 : vector<2x64xf32>
    %cst_61 = arith.constant 1.000000e+00 : f32
    %396 = vector.broadcast %cst_61 : f32 to vector<2x64xf32>
    %397 = arith.subf %396, %389 : vector<2x64xf32>
    %398 = arith.mulf %397, %395 : vector<2x64xf32>
    %399 = arith.mulf %389, %375 : vector<2x64xf32>
    %400 = arith.addf %398, %399 : vector<2x64xf32>
    %401 = vector.extract_strided_slice %400 {offsets = [0, 0], sizes = [2, 32], strides = [1, 1]} : vector<2x64xf32> to vector<2x32xf32>
    %402 = vector.extract_strided_slice %400 {offsets = [0, 32], sizes = [2, 32], strides = [1, 1]} : vector<2x64xf32> to vector<2x32xf32>
    %cst_62 = arith.constant dense<0.000000e+00> : vector<2x192xf32>
    %403 = tpu.matmul %400, %238, %cst_62 {dimension_numbers = #tpu.dot_dimension_numbers<[1], [0], [0], [1], [0, 0, 1, 1], [], []>} : vector<2x64xf32>, vector<64x192xf32>, vector<2x192xf32> -> vector<2x192xf32>
    %404 = vector.extract_strided_slice %249 {offsets = [12, 0], sizes = [2, 192], strides = [1, 1]} : vector<16x192xf32> to vector<2x192xf32>
    %405 = vector.extract_strided_slice %404 {offsets = [0, 0], sizes = [2, 128], strides = [1, 1]} : vector<2x192xf32> to vector<2x128xf32>
    %406 = vector.extract_strided_slice %403 {offsets = [0, 0], sizes = [2, 128], strides = [1, 1]} : vector<2x192xf32> to vector<2x128xf32>
    %407 = arith.addf %405, %406 : vector<2x128xf32>
    %408 = arith.negf %407 : vector<2x128xf32>
    %409 = math.exp %408 : vector<2x128xf32>
    %cst_63 = arith.constant 1.000000e+00 : f32
    %410 = vector.broadcast %cst_63 : f32 to vector<2x128xf32>
    %411 = arith.addf %410, %409 : vector<2x128xf32>
    %412 = arith.divf %410, %411 : vector<2x128xf32>
    %413 = vector.extract_strided_slice %412 {offsets = [0, 0], sizes = [2, 64], strides = [1, 1]} : vector<2x128xf32> to vector<2x64xf32>
    %414 = vector.extract_strided_slice %412 {offsets = [0, 64], sizes = [2, 64], strides = [1, 1]} : vector<2x128xf32> to vector<2x64xf32>
    %415 = vector.extract_strided_slice %404 {offsets = [0, 128], sizes = [2, 64], strides = [1, 1]} : vector<2x192xf32> to vector<2x64xf32>
    %416 = vector.extract_strided_slice %403 {offsets = [0, 128], sizes = [2, 64], strides = [1, 1]} : vector<2x192xf32> to vector<2x64xf32>
    %417 = arith.addf %416, %251 : vector<2x64xf32>
    %418 = arith.mulf %413, %417 : vector<2x64xf32>
    %419 = arith.addf %415, %418 : vector<2x64xf32>
    %420 = math.tanh %419 : vector<2x64xf32>
    %cst_64 = arith.constant 1.000000e+00 : f32
    %421 = vector.broadcast %cst_64 : f32 to vector<2x64xf32>
    %422 = arith.subf %421, %414 : vector<2x64xf32>
    %423 = arith.mulf %422, %420 : vector<2x64xf32>
    %424 = arith.mulf %414, %400 : vector<2x64xf32>
    %425 = arith.addf %423, %424 : vector<2x64xf32>
    %426 = vector.extract_strided_slice %425 {offsets = [0, 0], sizes = [2, 32], strides = [1, 1]} : vector<2x64xf32> to vector<2x32xf32>
    %427 = vector.extract_strided_slice %425 {offsets = [0, 32], sizes = [2, 32], strides = [1, 1]} : vector<2x64xf32> to vector<2x32xf32>
    %cst_65 = arith.constant dense<0.000000e+00> : vector<2x192xf32>
    %428 = tpu.matmul %425, %238, %cst_65 {dimension_numbers = #tpu.dot_dimension_numbers<[1], [0], [0], [1], [0, 0, 1, 1], [], []>} : vector<2x64xf32>, vector<64x192xf32>, vector<2x192xf32> -> vector<2x192xf32>
    %429 = vector.extract_strided_slice %249 {offsets = [14, 0], sizes = [2, 192], strides = [1, 1]} : vector<16x192xf32> to vector<2x192xf32>
    %430 = vector.extract_strided_slice %429 {offsets = [0, 0], sizes = [2, 128], strides = [1, 1]} : vector<2x192xf32> to vector<2x128xf32>
    %431 = vector.extract_strided_slice %428 {offsets = [0, 0], sizes = [2, 128], strides = [1, 1]} : vector<2x192xf32> to vector<2x128xf32>
    %432 = arith.addf %430, %431 : vector<2x128xf32>
    %433 = arith.negf %432 : vector<2x128xf32>
    %434 = math.exp %433 : vector<2x128xf32>
    %cst_66 = arith.constant 1.000000e+00 : f32
    %435 = vector.broadcast %cst_66 : f32 to vector<2x128xf32>
    %436 = arith.addf %435, %434 : vector<2x128xf32>
    %437 = arith.divf %435, %436 : vector<2x128xf32>
    %438 = vector.extract_strided_slice %437 {offsets = [0, 0], sizes = [2, 64], strides = [1, 1]} : vector<2x128xf32> to vector<2x64xf32>
    %439 = vector.extract_strided_slice %437 {offsets = [0, 64], sizes = [2, 64], strides = [1, 1]} : vector<2x128xf32> to vector<2x64xf32>
    %440 = vector.extract_strided_slice %429 {offsets = [0, 128], sizes = [2, 64], strides = [1, 1]} : vector<2x192xf32> to vector<2x64xf32>
    %441 = vector.extract_strided_slice %428 {offsets = [0, 128], sizes = [2, 64], strides = [1, 1]} : vector<2x192xf32> to vector<2x64xf32>
    %442 = arith.addf %441, %251 : vector<2x64xf32>
    %443 = arith.mulf %438, %442 : vector<2x64xf32>
    %444 = arith.addf %440, %443 : vector<2x64xf32>
    %445 = math.tanh %444 : vector<2x64xf32>
    %cst_67 = arith.constant 1.000000e+00 : f32
    %446 = vector.broadcast %cst_67 : f32 to vector<2x64xf32>
    %447 = arith.subf %446, %439 : vector<2x64xf32>
    %448 = arith.mulf %447, %445 : vector<2x64xf32>
    %449 = arith.mulf %439, %425 : vector<2x64xf32>
    %450 = arith.addf %448, %449 : vector<2x64xf32>
    %451 = vector.extract_strided_slice %450 {offsets = [0, 0], sizes = [2, 32], strides = [1, 1]} : vector<2x64xf32> to vector<2x32xf32>
    %452 = vector.extract_strided_slice %450 {offsets = [0, 32], sizes = [2, 32], strides = [1, 1]} : vector<2x64xf32> to vector<2x32xf32>
    %453 = tpu.concatenate %276, %452 in 1 : vector<2x32xf32>, vector<2x32xf32> -> vector<2x64xf32>
    %454 = tpu.concatenate %301, %427 in 1 : vector<2x32xf32>, vector<2x32xf32> -> vector<2x64xf32>
    %455 = tpu.concatenate %326, %402 in 1 : vector<2x32xf32>, vector<2x32xf32> -> vector<2x64xf32>
    %456 = tpu.concatenate %351, %377 in 1 : vector<2x32xf32>, vector<2x32xf32> -> vector<2x64xf32>
    %457 = tpu.concatenate %376, %352 in 1 : vector<2x32xf32>, vector<2x32xf32> -> vector<2x64xf32>
    %458 = tpu.concatenate %401, %327 in 1 : vector<2x32xf32>, vector<2x32xf32> -> vector<2x64xf32>
    %459 = tpu.concatenate %426, %302 in 1 : vector<2x32xf32>, vector<2x32xf32> -> vector<2x64xf32>
    %460 = tpu.concatenate %451, %277 in 1 : vector<2x32xf32>, vector<2x32xf32> -> vector<2x64xf32>
    %461 = tpu.concatenate %453, %454, %455, %456, %457, %458, %459, %460 in 1 : vector<2x64xf32>, vector<2x64xf32>, vector<2x64xf32>, vector<2x64xf32>, vector<2x64xf32>, vector<2x64xf32>, vector<2x64xf32>, vector<2x64xf32> -> vector<2x512xf32>
    %cst_68 = arith.constant 0.000000e+00 : f32
    %462 = vector.broadcast %cst_68 : f32 to vector<2x512xf32>
    %463 = arith.maximumf %461, %462 : vector<2x512xf32>
    %c0_69 = arith.constant 0 : index
    %c0_70 = arith.constant 0 : index
    %464 = vector.load %arg9[%c0_69, %c0_70] : memref<512x64xf32, #tpu.memory_space<vmem>>, vector<512x64xf32>
    %c0_71 = arith.constant 0 : index
    %c0_72 = arith.constant 0 : index
    %465 = vector.load %arg10[%c0_71, %c0_72] : memref<1x64xf32, #tpu.memory_space<vmem>>, vector<1x64xf32>
    %cst_73 = arith.constant dense<0.000000e+00> : vector<2x64xf32>
    %466 = tpu.matmul %463, %464, %cst_73 {dimension_numbers = #tpu.dot_dimension_numbers<[1], [0], [0], [1], [0, 0, 1, 1], [], []>} : vector<2x512xf32>, vector<512x64xf32>, vector<2x64xf32> -> vector<2x64xf32>
    %467 = vector.broadcast %465 : vector<1x64xf32> to vector<2x64xf32>
    %468 = arith.addf %466, %467 : vector<2x64xf32>
    %cst_74 = arith.constant 0.000000e+00 : f32
    %469 = vector.broadcast %cst_74 : f32 to vector<2x64xf32>
    %470 = arith.maximumf %468, %469 : vector<2x64xf32>
    %c0_75 = arith.constant 0 : index
    %c0_76 = arith.constant 0 : index
    %471 = vector.load %arg11[%c0_75, %c0_76] : memref<64x64xf32, #tpu.memory_space<vmem>>, vector<64x64xf32>
    %c0_77 = arith.constant 0 : index
    %c0_78 = arith.constant 0 : index
    %472 = vector.load %arg12[%c0_77, %c0_78] : memref<1x64xf32, #tpu.memory_space<vmem>>, vector<1x64xf32>
    %cst_79 = arith.constant dense<0.000000e+00> : vector<2x64xf32>
    %473 = tpu.matmul %470, %471, %cst_79 {dimension_numbers = #tpu.dot_dimension_numbers<[1], [0], [0], [1], [0, 0, 1, 1], [], []>} : vector<2x64xf32>, vector<64x64xf32>, vector<2x64xf32> -> vector<2x64xf32>
    %474 = vector.broadcast %472 : vector<1x64xf32> to vector<2x64xf32>
    %475 = arith.addf %473, %474 : vector<2x64xf32>
    %cst_80 = arith.constant 0.000000e+00 : f32
    %476 = vector.broadcast %cst_80 : f32 to vector<2x64xf32>
    %477 = arith.maximumf %475, %476 : vector<2x64xf32>
    %c0_81 = arith.constant 0 : index
    %c0_82 = arith.constant 0 : index
    %478 = vector.load %arg13[%c0_81, %c0_82] : memref<64x4xf32, #tpu.memory_space<vmem>>, vector<64x4xf32>
    %c0_83 = arith.constant 0 : index
    %c0_84 = arith.constant 0 : index
    %479 = vector.load %arg14[%c0_83, %c0_84] : memref<1x4xf32, #tpu.memory_space<vmem>>, vector<1x4xf32>
    %cst_85 = arith.constant dense<0.000000e+00> : vector<2x4xf32>
    %480 = tpu.matmul %477, %478, %cst_85 {dimension_numbers = #tpu.dot_dimension_numbers<[1], [0], [0], [1], [0, 0, 1, 1], [], []>} : vector<2x64xf32>, vector<64x4xf32>, vector<2x4xf32> -> vector<2x4xf32>
    %481 = vector.broadcast %479 : vector<1x4xf32> to vector<2x4xf32>
    %482 = arith.addf %480, %481 : vector<2x4xf32>
    %c0_86 = arith.constant 0 : index
    %c0_87 = arith.constant 0 : index
    %483 = vector.load %arg15[%c0_86, %c0_87] : memref<2x4xf32, #tpu.memory_space<vmem>>, vector<2x4xf32>
    tpu.vector_store %arg15[%c0_86, %c0_87], %482 {strides = array<i32>} : memref<2x4xf32, #tpu.memory_space<vmem>>, vector<2x4xf32>,
    return
  }
}

</mosaic_0001>

<bundles_post_ra>
// kernel: model_forward.1
= control target key start
LH: loop header
LB: loop body
LE: loop exit
PB: predicated region body
PF: predicated region fallthrough
CT: control target
= control target key end

     0   :  { %s3401_s16 = smov 127   ;;  %s3402_s17 = smov 125   ;;  %v3403_v17 = vmov 0.0   ;;  %v3404_v19 = vmov 0   ;;  %v3405_v23 = vmov 7   ;;  %s4528_s0 = inlined_call_operand.vmem [shape: f32[2,8], index: 0, kind: input, shape index: {}]   ;;  %s4529_s1 = inlined_call_operand.vmem [shape: f32[2,192], index: 1, kind: input, shape index: {}]   ;;  %s4530_s2 = inlined_call_operand.vmem [shape: f32[64,192], index: 2, kind: input, shape index: {}]   ;;  %s4531_s3 = inlined_call_operand.vmem [shape: f32[1,192], index: 3, kind: input, shape index: {}]   ;;  %s4532_s4 = inlined_call_operand.vmem [shape: f32[1,64], index: 4, kind: input, shape index: {}]   ;;  %s4533_s5 = inlined_call_operand.vmem [shape: f32[128,192], index: 5, kind: input, shape index: {}]   ;;  %s4534_s6 = inlined_call_operand.vmem [shape: f32[64,192], index: 6, kind: input, shape index: {}]   ;;  %s4535_s7 = inlined_call_operand.vmem [shape: f32[1,192], index: 7, kind: input, shape index: {}]   ;;  %s4536_s8 = inlined_call_operand.vmem [shape: f32[1,64], index: 8, kind: input, shape index: {}]   ;;  %s4537_s9 = inlined_call_operand.vmem [shape: f32[512,64], index: 9, kind: input, shape index: {}]   ;;  %s4538_s10 = inlined_call_operand.vmem [shape: f32[1,64], index: 10, kind: input, shape index: {}]   ;;  %s4539_s11 = inlined_call_operand.vmem [shape: f32[64,64], index: 11, kind: input, shape index: {}]   ;;  %s4540_s12 = inlined_call_operand.vmem [shape: f32[1,64], index: 12, kind: input, shape index: {}]   ;;  %s4541_s13 = inlined_call_operand.vmem [shape: f32[64,4], index: 13, kind: input, shape index: {}]   ;;  %s4542_s14 = inlined_call_operand.vmem [shape: f32[1,4], index: 14, kind: input, shape index: {}]   ;;  %s4543_s15 = inlined_call_operand.hbm [shape: f32[2,4], index: 15, kind: output, shape index: {}]  }
   0x1   :  { %v3505_v0 = vld [vmem:[%s4528_s0] sm:$0x3]  ;;  %v54_v1 = vld [vmem:[%s4530_s2 + $0x8] sm:$0xff]  ;;  %v56_v2 = vld [vmem:[%s4530_s2 + $0x18] sm:$0xff]  ;;  %290 = vmatprep.mubr.f32.mxu0 %v3403_v17  ;;  %3237 = vset.pattern.permute.xlu0 %v3404_v19  ;;  %s3406_s29 = smov 126   ;;  %s3407_s30 = smov 1  }
   0x2   :  { %v3514_v3 = vrot.slane %v3505_v0, 6  ;;  %v3517_v4 = vrot.slane %v3505_v0, 2  ;;  %v3519_v5 = vpack.c.bf16 %v56_v2, %v54_v1  ;;  %v53_v6 = vld [vmem:[%s4530_s2] sm:$0xff]  ;;  %v55_v7 = vld [vmem:[%s4530_s2 + $0x10] sm:$0xff]  ;;  %v58_v8 = vld [vmem:[%s4530_s2 + $0x28] sm:$0xff]  ;;  %v3536_v10 = vrot.slane %v3505_v0, 4  ;;  %3238 = vset.pattern.permute.xlu1 %v3405_v23  ;;  %385 = vmatprep.mubr.f32.mxu1 %v3403_v17 }
   0x3   :  { %v60_v9 = vld [vmem:[%s4530_s2 + $0x38] sm:$0xff]  ;;  %v3538_v11 = vpack.c.bf16 %v55_v7, %v53_v6  ;;  %v57_v13 = vld [vmem:[%s4530_s2 + $0x20] sm:$0xff]  ;;  %v59_v14 = vld [vmem:[%s4530_s2 + $0x30] sm:$0xff] }
   0x4   :  { %73 = vrot.lane.b32.xlu0 %v3514_v3, %s3401_s16  ;;  %81 = vrot.lane.b32.xlu1 %v3517_v4, %s3402_s17  ;;  %v3540_v12 = vpack.c.bf16 %v60_v9, %v58_v8  ;;  %v62_v15 = vld [vmem:[%s4530_s2 + $0x48] sm:$0xff]  ;;  %v64_v16 = vld [vmem:[%s4530_s2 + $0x58] sm:$0xff]  ;;  %v3557_v18 = vpack.c.bf16 %v59_v14, %v57_v13 }
   0x5   :  { %2837 = vmatprep.subr.bf16.mxu0 %v3519_v5  ;;  %v3561_v20 = vpack.c.bf16 %v64_v16, %v62_v15  ;;  %v61_v21 = vld [vmem:[%s4530_s2 + $0x40] sm:$0xff]  ;;  %v63_v22 = vld [vmem:[%s4530_s2 + $0x50] sm:$0xff]  ;;  %v66_v24 = vld [vmem:[%s4530_s2 + $0x68] sm:$0xff]  ;;  %2853 = vmatprep.subr.bf16.mxu1 %v3519_v5 }
   0x6   :  { %2839 = vmatpush1.bf16.msra.mxu0 %v3538_v11  ;;  %v68_v25 = vld [vmem:[%s4530_s2 + $0x78] sm:$0xff] }
   0x7   :  { %2841 = vmatprep.subr.bf16.mxu0 %v3540_v12 }
   0x8   :  { %77 = vrot.lane.b32.xlu0 %v3536_v10, %s3406_s29  ;;  %105 = vrot.lane.b32.xlu1 %v3514_v3, %s3407_s30 }
   0x9   :  { %20 = vsyncpa [#allocation3], 0  ;;  %v3580_v26 = vpack.c.bf16 %v63_v22, %v61_v21  ;;  %v3583_v27 = vpack.c.bf16 %v68_v25, %v66_v24  ;;  %v65_v28 = vld [vmem:[%s4530_s2 + $0x60] sm:$0xff]  ;;  %v67_v29 = vld [vmem:[%s4530_s2 + $0x70] sm:$0xff]  ;;  %2855 = vmatpush1.bf16.msra.mxu1 %v3538_v11  ;;  %s3408_s24 = smov 2   ;;  %s3409_s25 = smov 3   ;;  %v143_v44 = vlaneseq }
   0xa   :  { %2843 = vmatpush1.bf16.msra.mxu0 %v3557_v18  ;;  %2857 = vmatprep.subr.bf16.mxu1 %v3540_v12  ;;  %v3596_v30 = vpack.c.bf16 %v67_v29, %v65_v28  ;;  %vm96_vm0 = vcmask 1041408   ;;  %vm98_vm1 = vcmask 1043456   ;;  %vm100_vm2 = vcmask 1045504   ;;  %v52_v48 = vld [vmem:[%s4529_s1] sm:$0xf]  ;;  %s3410_s28 = smov 64  }
   0xb   :  { %2845 = vmatprep.subr.bf16.mxu0 %v3561_v20  ;;  %v144_v46 = vshrl.u32 %v143_v44, 7  ;;  %v69_v53 = vld [vmem:[%s4531_s3] sm:$0x3]  ;;  %vm222_vm3 = vcmask 523264   ;;  %s3412_s29 = smov 122   ;;  %s3413_s30 = smov 4  }
   0xc   :  { %108 = vrot.lane.b32.xlu0 %v3536_v10, %s3408_s24  ;;  %111 = vrot.lane.b32.xlu1 %v3517_v4, %s3409_s25  ;;  %s3414_s16 = smov 6   ;;  %s3415_s17 = smov 123   ;;  %vm1041_vm4 = vcmask 261120   ;;  %vm3420_vm5 = vmmov 0   ;;  %vm2653_vm6 = vcmask 25600  }
   0xd   :  { %2859 = vmatpush1.bf16.msra.mxu1 %v3557_v18  ;;  %v3626_v47 = vsub.s32 0, %v144_v46  ;;  %v3632_v50 = vsub.s32 1, %v144_v46  ;;  %v149_v1 = vsub.s32 2, %v144_v46  ;;  %v196_v2 = vsub.s32 3, %v144_v46  ;;  %s3416_s18 = smov 121   ;;  %s3417_s19 = smov 5  }
   0xe   :  { %2847 = vmatpush1.bf16.msra.mxu0 %v3580_v26  ;;  %2861 = vmatprep.subr.bf16.mxu1 %v3561_v20  ;;  %s3418_s20 = smov 7   ;;  %s3421_s21 = smov [#allocation2]  }
   0xf   :  { %2849 = vmatprep.subr.bf16.mxu0 %v3583_v27  ;;  %v146_v49 = vrot.slane %v52_v48, %v3626_v47  ;;  %v193_v52 = vrot.slane %v52_v48, %v3632_v50  ;;  %v3642_v55 = vrot.slane %v69_v53, %v3626_v47  ;;  %v150_v7 = vrot.slane %v52_v48, %v149_v1 }
  0x10   :  { %v197_v9 = vrot.slane %v52_v48, %v196_v2  ;;  %v3660_v15 = vrot.slane %v69_v53, %v3632_v50 }
  0x11   :  { %2863 = vmatpush1.bf16.msra.mxu1 %v3580_v26  ;;  %v3635_v51 = vrot.slane %v146_v49, %v3626_v47  ;;  %v3646_v57 = vrot.slane %v193_v52, %v3632_v50  ;;  %v3654_v13 = vrot.slane %v150_v7, %v3626_v47 }
  0x12   :  { %2851 = vmatpush1.bf16.msra.mxu0 %v3596_v30  ;;  %2865 = vmatprep.subr.bf16.mxu1 %v3583_v27  ;;  %v3657_v14 = vrot.slane %v197_v9, %v3632_v50 }
  0x13   :  { %2869 = vmatprep.subr.bf16.mxu0 %v3519_v5 }
  0x15   :  { %291 = vmatmul.mubr.f32.vlgmr.msra.gmra.mrb[0].mxu0 %v3403_v17  ;;  %2867 = vmatpush1.bf16.msra.mxu1 %v3596_v30 }
  0x16   :  { %2871 = vmatpush1.bf16.msra.mxu0 %v3538_v11  ;;  %489 = vmatprep.mubr.f32.mxu0 %v3403_v17 }
  0x17   :  { %2873 = vmatprep.subr.bf16.mxu0 %v3540_v12  ;;  %2885 = vmatprep.subr.bf16.mxu1 %v3519_v5 }
  0x1a   :  { %2875 = vmatpush1.bf16.msra.mxu0 %v3557_v18 }
  0x1b   :  { %2877 = vmatprep.subr.bf16.mxu0 %v3561_v20 }
  0x1e   :  { %2879 = vmatpush1.bf16.msra.mxu0 %v3580_v26 }
  0x1f   :  { %2881 = vmatprep.subr.bf16.mxu0 %v3583_v27 }
  0x22   :  { %2883 = vmatpush1.bf16.msra.mxu0 %v3596_v30 }
  0x23   :  { %2901 = vmatprep.subr.bf16.mxu0 %v3519_v5 }
  0x76   :  { %v74_v31 = vpop.permute.xlu0 %73  ;;  %v82_v32 = vpop.permute.xlu1 %81 }
  0x77   :  { %v97_v33 = vsel %vm96_vm0, %v3505_v0, %v74_v31 }
  0x7a   :  { %v78_v34 = vpop.permute.xlu0 %77  ;;  %v106_v35 = vpop.permute.xlu1 %105 }
  0x7b   :  { %v99_v36 = vsel %vm98_vm1, %v97_v33, %v78_v34  ;;  %v126_v38 = vsel %vm96_vm0, %v3505_v0, %v106_v35 }
  0x7c   :  { %v101_v37 = vsel %vm100_vm2, %v99_v36, %v82_v32 }
  0x7d   :  { %134 = vperm.xlu0 %3237, %v101_v37  }
  0x7e   :  { %v109_v39 = vpop.permute.xlu0 %108  ;;  %v112_v40 = vpop.permute.xlu1 %111 }
  0x7f   :  { %v127_v41 = vsel %vm98_vm1, %v126_v38, %v109_v39 }
  0x80   :  { %v128_v42 = vsel %vm100_vm2, %v127_v41, %v112_v40 }
  0x81   :  { %182 = vperm.xlu1 %3238, %v128_v42   ;;  %3240 = vset.pattern.permute.xlu0 %v3405_v23 }
  0x85   :  { %3239 = vset.pattern.permute.xlu1 %v3404_v19  ;;  %v3666_v19 = vld [vmem:[%s4532_s4] ss:$0 sm:$0xff]  ;;  %s3411_s4 = smov 124  }
  0xe8   :  { %v292_v43 = vpop.f32.mrb[0].mxu0 }
  0xe9   :  { %v294_v45 = vpop.f32.mrb[1].mxu0 }
  0xea   :  { %v304_v23 = vadd.f32 %v3666_v19, %v294_v45 }
  0xfc   :  { %v135_v54 = vpop.permute.xlu0 %134 }
  0xfd   :  { %v161_v56 = vmul.f32 %v3635_v51, %v135_v54  ;;  %v162_v16 = vmul.f32 %v3654_v13, %v135_v54 }
  0xff   :  { %v176_v59 = vadd.f32 %v3642_v55, %v161_v56  ;;  %v177_v22 = vadd.f32 %v3660_v15, %v162_v16 }
 0x100   :  { %v183_v58 = vpop.permute.xlu1 %182 }
 0x101   :  { %v208_v60 = vmul.f32 %v3646_v57, %v183_v58  ;;  %v209_v21 = vmul.f32 %v3657_v14, %v183_v58 }
 0x103   :  { %v3650_v61 = vadd.f32 %v208_v60, %v176_v59  ;;  %v3671_v25 = vadd.f32 %v209_v21, %v177_v22 }
 0x105   :  { %v297_v62 = vadd.f32 %v292_v43, %v3650_v61 }
 0x107   :  { %v2670_v63 = vmul.f32 -1.442695, %v297_v62 }
 0x109   :  { %3281 = vpow2.f32 %v2670_v63 }
 0x113   :  { %v3282_v6 = vpop.eup %3281 }
 0x114   :  { %v301_v8 = vadd.f32 1.0, %v3282_v6 }
 0x116   :  { %3283 = vrcp.f32 %v301_v8 }
 0x120   :  { %v3284_v24 = vpop.eup %3283 }
 0x121   :  { %v305_v28 = vmul.f32 %v3284_v24, %v304_v23  ;;  %v308_v32 = vsub.f32 1.0, %v3284_v24  ;;  %v314_v34 = vmul.f32 0.0, %v3284_v24 }
 0x123   :  { %v306_v29 = vadd.f32 %v305_v28, %v3671_v25 }
 0x125   :  { %3285 = vtanh.f32 %v306_v29 }
 0x12f   :  { %v3286_v31 = vpop.eup %3285 }
 0x130   :  { %310 = vrot.lane.b32.xlu1 %v3286_v31, %s3410_s28 }
 0x1a2   :  { %v311_v33 = vpop.permute.xlu1 %310 }
 0x1a3   :  { %v313_v35 = vmul.f32 %v311_v33, %v308_v32 }
 0x1a5   :  { %v3675_v36 = vadd.f32 %v314_v34, %v313_v35 }
 0x1a7   :  { %317 = vrot.lane.b32.xlu0 %v3675_v36, %s3410_s28  ;;  %v415_v48 = vrot.slane %v3675_v36, 6 }
 0x219   :  { %v3679_v37 = vpop.permute.xlu0 %317 }
 0x21a   :  { %2671 = vmatmul.mubr.msk.f32.vlgmr.msra.gmra.mrb[0].mxu1 %vm222_vm3, %v3679_v37 }
 0x21b   :  { %2887 = vmatpush1.bf16.msra.mxu1 %v3538_v11  ;;  %593 = vmatprep.mubr.f32.mxu1 %v3403_v17 }
 0x21c   :  { %2889 = vmatprep.subr.bf16.mxu1 %v3540_v12 }
 0x21f   :  { %2891 = vmatpush1.bf16.msra.mxu1 %v3557_v18 }
 0x220   :  { %2893 = vmatprep.subr.bf16.mxu1 %v3561_v20 }
 0x223   :  { %2895 = vmatpush1.bf16.msra.mxu1 %v3580_v26 }
 0x224   :  { %2897 = vmatprep.subr.bf16.mxu1 %v3583_v27 }
 0x227   :  { %2899 = vmatpush1.bf16.msra.mxu1 %v3596_v30 }
 0x228   :  { %2917 = vmatprep.subr.bf16.mxu1 %v3519_v5 }
 0x2ed   :  { %v387_v38 = vpop.f32.mrb[0].mxu1 }
 0x2ee   :  { %v393_v39 = vrot.slane %v387_v38, 6  ;;  %v389_v40 = vpop.f32.mrb[1].mxu1 }
 0x2ef   :  { %v402_v45 = vadd.f32 %v3666_v19, %v389_v40 }
 0x2f0   :  { %v395_v41 = vadd.f32 %v393_v39, %v3650_v61 }
 0x2f1   :  { %v404_v46 = vrot.slane %v402_v45, 6 }
 0x2f2   :  { %v2672_v42 = vmul.f32 -1.442695, %v395_v41 }
 0x2f4   :  { %3287 = vpow2.f32 %v2672_v42 }
 0x2fe   :  { %v3288_v43 = vpop.eup %3287 }
 0x2ff   :  { %v399_v44 = vadd.f32 1.0, %v3288_v43 }
 0x301   :  { %3289 = vrcp.f32 %v399_v44 }
 0x30b   :  { %v3290_v49 = vpop.eup %3289 }
 0x30c   :  { %v406_v52 = vmul.f32 %v3290_v49, %v404_v46  ;;  %v417_v53 = vmul.f32 %v3290_v49, %v415_v48  ;;  %v409_v58 = vsub.f32 1.0, %v3290_v49 }
 0x30e   :  { %v407_v54 = vadd.f32 %v406_v52, %v3671_v25 }
 0x310   :  { %3291 = vtanh.f32 %v407_v54 }
 0x31a   :  { %v3292_v56 = vpop.eup %3291 }
 0x31b   :  { %411 = vrot.lane.b32.xlu1 %v3292_v56, %s3410_s28 }
 0x38d   :  { %v412_v59 = vpop.permute.xlu1 %411 }
 0x38e   :  { %v414_v60 = vmul.f32 %v412_v59, %v409_v58 }
 0x390   :  { %v3697_v62 = vadd.f32 %v417_v53, %v414_v60 }
 0x392   :  { %v420_v63 = vrot.slane %v3697_v62, 2  ;;  %v519_v33 = vrot.slane %v3697_v62, 6 }
 0x394   :  { %421 = vrot.lane.b32.xlu0 %v420_v63, %s3410_s28 }
 0x406   :  { %v422_v1 = vpop.permute.xlu0 %421 }
 0x407   :  { %2673 = vmatmul.mubr.msk.f32.vlgmr.msra.gmra.mrb[2].mxu0 %vm222_vm3, %v422_v1 }
 0x408   :  { %2903 = vmatpush1.bf16.msra.mxu0 %v3538_v11  ;;  %697 = vmatprep.mubr.f32.mxu0 %v3403_v17 }
 0x409   :  { %2905 = vmatprep.subr.bf16.mxu0 %v3540_v12 }
 0x40c   :  { %2907 = vmatpush1.bf16.msra.mxu0 %v3557_v18 }
 0x40d   :  { %2909 = vmatprep.subr.bf16.mxu0 %v3561_v20 }
 0x410   :  { %2911 = vmatpush1.bf16.msra.mxu0 %v3580_v26 }
 0x411   :  { %2913 = vmatprep.subr.bf16.mxu0 %v3583_v27 }
 0x414   :  { %2915 = vmatpush1.bf16.msra.mxu0 %v3596_v30 }
 0x415   :  { %2933 = vmatprep.subr.bf16.mxu0 %v3519_v5 }
 0x4da   :  { %v491_v2 = vpop.f32.mrb[2].mxu0 }
 0x4db   :  { %v497_v6 = vrot.slane %v491_v2, 4  ;;  %v493_v7 = vpop.f32.mrb[3].mxu0 }
 0x4dc   :  { %v506_v22 = vadd.f32 %v3666_v19, %v493_v7 }
 0x4dd   :  { %v499_v8 = vadd.f32 %v497_v6, %v3650_v61 }
 0x4de   :  { %v508_v23 = vrot.slane %v506_v22, 4 }
 0x4df   :  { %v2674_v9 = vmul.f32 -1.442695, %v499_v8 }
 0x4e1   :  { %3293 = vpow2.f32 %v2674_v9 }
 0x4eb   :  { %v3294_v16 = vpop.eup %3293 }
 0x4ec   :  { %v503_v21 = vadd.f32 1.0, %v3294_v16 }
 0x4ee   :  { %3295 = vrcp.f32 %v503_v21 }
 0x4f8   :  { %v3296_v24 = vpop.eup %3295 }
 0x4f9   :  { %v510_v28 = vmul.f32 %v3296_v24, %v508_v23  ;;  %v513_v32 = vsub.f32 1.0, %v3296_v24  ;;  %v521_v35 = vmul.f32 %v3296_v24, %v519_v33 }
 0x4fb   :  { %v511_v29 = vadd.f32 %v510_v28, %v3671_v25 }
 0x4fd   :  { %3297 = vtanh.f32 %v511_v29 }
 0x507   :  { %v3298_v31 = vpop.eup %3297 }
 0x508   :  { %515 = vrot.lane.b32.xlu1 %v3298_v31, %s3410_s28 }
 0x57a   :  { %v516_v34 = vpop.permute.xlu1 %515 }
 0x57b   :  { %v518_v38 = vmul.f32 %v516_v34, %v513_v32 }
 0x57d   :  { %v3718_v39 = vadd.f32 %v521_v35, %v518_v38 }
 0x57f   :  { %v524_v40 = vrot.slane %v3718_v39, 4 }
 0x581   :  { %525 = vrot.lane.b32.xlu0 %v524_v40, %s3410_s28 }
 0x5f3   :  { %v526_v41 = vpop.permute.xlu0 %525 }
 0x5f4   :  { %2675 = vmatmul.mubr.msk.f32.vlgmr.msra.gmra.mrb[2].mxu1 %vm222_vm3, %v526_v41 }
 0x5f5   :  { %2919 = vmatpush1.bf16.msra.mxu1 %v3538_v11  ;;  %793 = vmatprep.mubr.f32.mxu1 %v3403_v17 }
 0x5f6   :  { %2921 = vmatprep.subr.bf16.mxu1 %v3540_v12 }
 0x5f9   :  { %2923 = vmatpush1.bf16.msra.mxu1 %v3557_v18 }
 0x5fa   :  { %2925 = vmatprep.subr.bf16.mxu1 %v3561_v20 }
 0x5fd   :  { %2927 = vmatpush1.bf16.msra.mxu1 %v3580_v26 }
 0x5fe   :  { %2929 = vmatprep.subr.bf16.mxu1 %v3583_v27 }
 0x601   :  { %2931 = vmatpush1.bf16.msra.mxu1 %v3596_v30 }
 0x602   :  { %2949 = vmatprep.subr.bf16.mxu1 %v3519_v5 }
 0x6c7   :  { %v595_v42 = vpop.f32.mrb[2].mxu1 }
 0x6c8   :  { %v601_v43 = vrot.slane %v595_v42, 2  ;;  %v597_v44 = vpop.f32.mrb[3].mxu1 }
 0x6c9   :  { %v610_v52 = vadd.f32 %v3666_v19, %v597_v44 }
 0x6ca   :  { %v603_v45 = vadd.f32 %v601_v43, %v3650_v61  ;;  %v623_v61 = vrot.slane %v3718_v39, 6 }
 0x6cb   :  { %v612_v53 = vrot.slane %v610_v52, 2 }
 0x6cc   :  { %v2676_v46 = vmul.f32 -1.442695, %v603_v45 }
 0x6ce   :  { %3299 = vpow2.f32 %v2676_v46 }
 0x6d8   :  { %v3300_v48 = vpop.eup %3299 }
 0x6d9   :  { %v607_v49 = vadd.f32 1.0, %v3300_v48 }
 0x6db   :  { %3301 = vrcp.f32 %v607_v49 }
 0x6e5   :  { %v3302_v54 = vpop.eup %3301 }
 0x6e6   :  { %v614_v56 = vmul.f32 %v3302_v54, %v612_v53  ;;  %v617_v5 = vsub.f32 1.0, %v3302_v54  ;;  %v625_v60 = vmul.f32 %v3302_v54, %v623_v61 }
 0x6e8   :  { %v615_v58 = vadd.f32 %v614_v56, %v3671_v25 }
 0x6ea   :  { %3303 = vtanh.f32 %v615_v58 }
 0x6f4   :  { %v3304_v59 = vpop.eup %3303 }
 0x6f5   :  { %619 = vrot.lane.b32.xlu1 %v3304_v59, %s3410_s28 }
 0x6f9   :  { %84 = vrot.lane.b32.xlu1 %v3505_v0, %s3411_s4 }
 0x6fd   :  { %90 = vrot.lane.b32.xlu1 %v3536_v10, %s3412_s29 }
 0x701   :  { %114 = vrot.lane.b32.xlu1 %v3505_v0, %s3413_s30 }
 0x705   :  { %120 = vrot.lane.b32.xlu1 %v3536_v10, %s3414_s16 }
 0x767   :  { %v620_v25 = vpop.permute.xlu1 %619 }
 0x768   :  { %v622_v63 = vmul.f32 %v620_v25, %v617_v5 }
 0x76a   :  { %v3741_v1 = vadd.f32 %v625_v60, %v622_v63 }
 0x76b   :  { %v85_v0 = vpop.permute.xlu1 %84 }
 0x76c   :  { %v628_v2 = vrot.slane %v3741_v1, 6 }
 0x76e   :  { %629 = vrot.lane.b32.xlu0 %v628_v2, %s3410_s28 }
 0x76f   :  { %v91_v10 = vpop.permute.xlu1 %90 }
 0x772   :  { %87 = vrot.lane.b32.xlu0 %v3514_v3, %s3415_s17 }
 0x776   :  { %93 = vrot.lane.b32.xlu0 %v3517_v4, %s3416_s18 }
 0x77a   :  { %117 = vrot.lane.b32.xlu0 %v3514_v3, %s3417_s19  ;;  %v115_v3 = vpop.permute.xlu1 %114 }
 0x77e   :  { %123 = vrot.lane.b32.xlu0 %v3517_v4, %s3418_s20  ;;  %v121_v21 = vpop.permute.xlu1 %120 }
 0x7e0   :  { %v3751_v6 = vpop.permute.xlu0 %629 }
 0x7e1   :  { %2677 = vmatmul.mubr.msk.f32.vlgmr.msra.gmra.mrb[4].mxu0 %vm222_vm3, %v3751_v6 }
 0x7e2   :  { %2935 = vmatpush1.bf16.msra.mxu0 %v3538_v11  ;;  %897 = vmatprep.mubr.f32.mxu0 %v3403_v17 }
 0x7e3   :  { %2937 = vmatprep.subr.bf16.mxu0 %v3540_v12 }
 0x7e4   :  { %v88_v7 = vpop.permute.xlu0 %87 }
 0x7e5   :  { %v102_v8 = vsel %vm96_vm0, %v85_v0, %v88_v7 }
 0x7e6   :  { %v103_v9 = vsel %vm98_vm1, %v102_v8, %v91_v10  ;;  %2939 = vmatpush1.bf16.msra.mxu0 %v3557_v18 }
 0x7e7   :  { %2941 = vmatprep.subr.bf16.mxu0 %v3561_v20 }
 0x7e8   :  { %v94_v4 = vpop.permute.xlu0 %93 }
 0x7e9   :  { %v104_v16 = vsel %vm100_vm2, %v103_v9, %v94_v4 }
 0x7ea   :  { %139 = vperm.xlu1 %3239, %v104_v16   ;;  %2943 = vmatpush1.bf16.msra.mxu0 %v3580_v26 }
 0x7eb   :  { %2945 = vmatprep.subr.bf16.mxu0 %v3583_v27 }
 0x7ec   :  { %v118_v22 = vpop.permute.xlu0 %117 }
 0x7ed   :  { %v129_v23 = vsel %vm96_vm0, %v115_v3, %v118_v22 }
 0x7ee   :  { %v130_v24 = vsel %vm98_vm1, %v129_v23, %v121_v21  ;;  %2947 = vmatpush1.bf16.msra.mxu0 %v3596_v30 }
 0x7f0   :  { %v124_v28 = vpop.permute.xlu0 %123 }
 0x7f1   :  { %v131_v29 = vsel %vm100_vm2, %v130_v24, %v124_v28 }
 0x7f2   :  { %187 = vperm.xlu0 %3240, %v131_v29  }
 0x869   :  { %v140_v31 = vpop.permute.xlu1 %139 }
 0x86a   :  { %v163_v32 = vmul.f32 %v3635_v51, %v140_v31  ;;  %v164_v48 = vmul.f32 %v3654_v13, %v140_v31 }
 0x86c   :  { %v178_v35 = vadd.f32 %v3642_v55, %v163_v32  ;;  %v179_v51 = vadd.f32 %v3660_v15, %v164_v48 }
 0x871   :  { %v188_v34 = vpop.permute.xlu0 %187 }
 0x872   :  { %v210_v38 = vmul.f32 %v3646_v57, %v188_v34  ;;  %v211_v49 = vmul.f32 %v3657_v14, %v188_v34 }
 0x874   :  { %v3772_v40 = vadd.f32 %v210_v38, %v178_v35  ;;  %v3779_v52 = vadd.f32 %v211_v49, %v179_v51 }
 0x8b4   :  { %v699_v41 = vpop.f32.mrb[4].mxu0 }
 0x8b5   :  { %v704_v42 = vadd.f32 %v699_v41, %v3772_v40  ;;  %v701_v43 = vpop.f32.mrb[5].mxu0 }
 0x8b6   :  { %v711_v55 = vadd.f32 %v3666_v19, %v701_v43 }
 0x8b7   :  { %v2678_v44 = vmul.f32 -1.442695, %v704_v42 }
 0x8b9   :  { %3305 = vpow2.f32 %v2678_v44 }
 0x8c3   :  { %v3306_v45 = vpop.eup %3305 }
 0x8c4   :  { %v708_v46 = vadd.f32 1.0, %v3306_v45 }
 0x8c6   :  { %3307 = vrcp.f32 %v708_v46 }
 0x8d0   :  { %v3308_v57 = vpop.eup %3307 }
 0x8d1   :  { %v712_v53 = vmul.f32 %v3308_v57, %v711_v55  ;;  %v715_v58 = vsub.f32 1.0, %v3308_v57  ;;  %v722_v13 = vmul.f32 %v3308_v57, %v628_v2 }
 0x8d3   :  { %v713_v54 = vadd.f32 %v712_v53, %v3779_v52 }
 0x8d5   :  { %3309 = vtanh.f32 %v713_v54 }
 0x8df   :  { %v3310_v56 = vpop.eup %3309 }
 0x8e0   :  { %717 = vrot.lane.b32.xlu1 %v3310_v56, %s3410_s28 }
 0x952   :  { %v718_v59 = vpop.permute.xlu1 %717 }
 0x953   :  { %v720_v15 = vmul.f32 %v718_v59, %v715_v58 }
 0x955   :  { %v3785_v5 = vadd.f32 %v722_v13, %v720_v15 }
 0x957   :  { %725 = vrot.lane.b32.xlu1 %v3785_v5, %s3410_s28 }
 0x9c9   :  { %v3789_v14 = vpop.permute.xlu1 %725 }
 0x9ca   :  { %2679 = vmatmul.mubr.msk.f32.vlgmr.msra.gmra.mrb[4].mxu1 %vm222_vm3, %v3789_v14 }
 0x9cb   :  { %2951 = vmatpush1.bf16.msra.mxu1 %v3538_v11  ;;  %1001 = vmatprep.mubr.f32.mxu1 %v3403_v17 }
 0x9cc   :  { %2953 = vmatprep.subr.bf16.mxu1 %v3540_v12 }
 0x9cf   :  { %2955 = vmatpush1.bf16.msra.mxu1 %v3557_v18 }
 0x9d0   :  { %2957 = vmatprep.subr.bf16.mxu1 %v3561_v20  ;;  %v823_v20 = vrot.slane %v3785_v5, 6 }
 0x9d3   :  { %2959 = vmatpush1.bf16.msra.mxu1 %v3580_v26 }
 0x9d4   :  { %2961 = vmatprep.subr.bf16.mxu1 %v3583_v27 }
 0x9d7   :  { %2963 = vmatpush1.bf16.msra.mxu1 %v3596_v30 }
 0xa9d   :  { %v795_v61 = vpop.f32.mrb[4].mxu1 }
 0xa9e   :  { %v801_v25 = vrot.slane %v795_v61, 6  ;;  %v797_v60 = vpop.f32.mrb[5].mxu1 }
 0xa9f   :  { %v810_v12 = vadd.f32 %v3666_v19, %v797_v60 }
 0xaa0   :  { %v803_v63 = vadd.f32 %v801_v25, %v3772_v40 }
 0xaa1   :  { %v812_v18 = vrot.slane %v810_v12, 6 }
 0xaa2   :  { %v2680_v11 = vmul.f32 -1.442695, %v803_v63 }
 0xaa4   :  { %3311 = vpow2.f32 %v2680_v11 }
 0xaae   :  { %v3312_v2 = vpop.eup %3311 }
 0xaaf   :  { %v807_v0 = vadd.f32 1.0, %v3312_v2 }
 0xab1   :  { %3313 = vrcp.f32 %v807_v0 }
 0xabb   :  { %v3314_v26 = vpop.eup %3313 }
 0xabc   :  { %v814_v10 = vmul.f32 %v3314_v26, %v812_v18  ;;  %v825_v27 = vmul.f32 %v3314_v26, %v823_v20  ;;  %v817_v8 = vsub.f32 1.0, %v3314_v26  ;;  %v1109_v18 = vld [vmem:[%s4533_s5 + $0x88] sm:$0xff]  ;;  %v1108_v20 = vld [vmem:[%s4533_s5 + $0x80] sm:$0xff] }
 0xabe   :  { %v815_v30 = vadd.f32 %v814_v10, %v3779_v52  ;;  %v1115_v10 = vld [vmem:[%s4533_s5 + $0xb8] sm:$0xff] }
 0xac0   :  { %3315 = vtanh.f32 %v815_v30 }
 0xaca   :  { %v3316_v7 = vpop.eup %3315 }
 0xacb   :  { %819 = vrot.lane.b32.xlu0 %v3316_v7, %s3410_s28  ;;  %v1112_v7 = vld [vmem:[%s4533_s5 + $0xa0] sm:$0xff] }
 0xb3d   :  { %v820_v3 = vpop.permute.xlu0 %819 }
 0xb3e   :  { %v822_v9 = vmul.f32 %v820_v3, %v817_v8  ;;  %v1114_v8 = vld [vmem:[%s4533_s5 + $0xb0] sm:$0xff]  ;;  %v1117_v3 = vld [vmem:[%s4533_s5 + $0xc8] sm:$0xff] }
 0xb40   :  { %v3806_v4 = vadd.f32 %v825_v27, %v822_v9  ;;  %v1119_v9 = vld [vmem:[%s4533_s5 + $0xd8] sm:$0xff] }
 0xb42   :  { %v828_v16 = vrot.slane %v3806_v4, 2  ;;  %v927_v45 = vrot.slane %v3806_v4, 6 }
 0xb44   :  { %829 = vrot.lane.b32.xlu1 %v828_v16, %s3410_s28  ;;  %v2972_v16 = vpack.c.bf16 %v1119_v9, %v1117_v3  ;;  %v1092_v3 = vld [vmem:[%s4533_s5] sm:$0xff]  ;;  %v1094_v9 = vld [vmem:[%s4533_s5 + $0x10] sm:$0xff] }
 0xbb6   :  { %v830_v21 = vpop.permute.xlu1 %829 }
 0xbb7   :  { %2681 = vmatmul.mubr.msk.f32.vlgmr.msra.gmra.mrb[6].mxu0 %vm222_vm3, %v830_v21  ;;  %v1116_v21 = vld [vmem:[%s4533_s5 + $0xc0] sm:$0xff] }
 0xbb8   :  { %1248 = vmatprep.mubr.f32.mxu0 %v3403_v17 }
 0xc8a   :  { %v899_v22 = vpop.f32.mrb[6].mxu0 }
 0xc8b   :  { %v905_v23 = vrot.slane %v899_v22, 4  ;;  %v901_v24 = vpop.f32.mrb[7].mxu0  ;;  %v1118_v22 = vld [vmem:[%s4533_s5 + $0xd0] sm:$0xff] }
 0xc8c   :  { %v914_v34 = vadd.f32 %v3666_v19, %v901_v24  ;;  %v2974_v24 = vpack.c.bf16 %v1118_v22, %v1116_v21  ;;  %v1097_v21 = vld [vmem:[%s4533_s5 + $0x28] sm:$0xff] }
 0xc8d   :  { %v907_v28 = vadd.f32 %v905_v23, %v3772_v40  ;;  %v1061_v23 = vrot.slane %v3785_v5, 2  ;;  %v1120_v5 = vld [vmem:[%s4533_s5 + $0xe0] sm:$0xff] }
 0xc8e   :  { %v916_v35 = vrot.slane %v914_v34, 4  ;;  %v1122_v34 = vld [vmem:[%s4533_s5 + $0xf0] sm:$0xff] }
 0xc8f   :  { %v2682_v29 = vmul.f32 -1.442695, %v907_v28 }
 0xc91   :  { %3317 = vpow2.f32 %v2682_v29  ;;  %v1121_v29 = vld [vmem:[%s4533_s5 + $0xe8] sm:$0xff] }
 0xc9b   :  { %v3318_v31 = vpop.eup %3317 }
 0xc9c   :  { %v911_v32 = vadd.f32 1.0, %v3318_v31  ;;  %v1123_v31 = vld [vmem:[%s4533_s5 + $0xf8] sm:$0xff] }
 0xc9e   :  { %3319 = vrcp.f32 %v911_v32  ;;  %v2976_v32 = vpack.c.bf16 %v1123_v31, %v1121_v29 }
 0xca8   :  { %v3320_v38 = vpop.eup %3319 }
 0xca9   :  { %v918_v41 = vmul.f32 %v3320_v38, %v916_v35  ;;  %v921_v44 = vsub.f32 1.0, %v3320_v38  ;;  %v929_v48 = vmul.f32 %v3320_v38, %v927_v45  ;;  %v2978_v35 = vpack.c.bf16 %v1122_v34, %v1120_v5  ;;  %v1093_v38 = vld [vmem:[%s4533_s5 + $0x8] sm:$0xff]  ;;  %v1098_v5 = vld [vmem:[%s4533_s5 + $0x30] sm:$0xff] }
 0xcab   :  { %v919_v42 = vadd.f32 %v918_v41, %v3779_v52  ;;  %v1095_v41 = vld [vmem:[%s4533_s5 + $0x18] sm:$0xff] }
 0xcad   :  { %3321 = vtanh.f32 %v919_v42  ;;  %v2980_v42 = vpack.c.bf16 %v1095_v41, %v1093_v38  ;;  %v1101_v38 = vld [vmem:[%s4533_s5 + $0x48] sm:$0xff]  ;;  %v1103_v41 = vld [vmem:[%s4533_s5 + $0x58] sm:$0xff] }
 0xcb7   :  { %v3322_v43 = vpop.eup %3321 }
 0xcb8   :  { %923 = vrot.lane.b32.xlu0 %v3322_v43, %s3410_s28  ;;  %v1125_v43 = vld [vmem:[%s4534_s6 + $0x8] sm:$0xff] }
 0xd2a   :  { %v924_v46 = vpop.permute.xlu0 %923 }
 0xd2b   :  { %v926_v51 = vmul.f32 %v924_v46, %v921_v44  ;;  %v1124_v46 = vld [vmem:[%s4534_s6] sm:$0xff] }
 0xd2d   :  { %v930_v49 = vadd.f32 %v929_v48, %v926_v51  ;;  %v1126_v48 = vld [vmem:[%s4534_s6 + $0x10] sm:$0xff] }
 0xd2f   :  { %v932_v55 = vrot.slane %v930_v49, 4  ;;  %v1031_v60 = vrot.slane %v930_v49, 6  ;;  %v1046_v28 = vrot.slane %v930_v49, 2 }
 0xd31   :  { %933 = vrot.lane.b32.xlu1 %v932_v55, %s3410_s28  ;;  %v3906_v55 = vpack.c.bf16 %v1126_v48, %v1124_v46  ;;  %v1102_v46 = vld [vmem:[%s4533_s5 + $0x50] sm:$0xff]  ;;  %v1105_v48 = vld [vmem:[%s4533_s5 + $0x68] sm:$0xff] }
 0xd35   :  { %1077 = vrot.lane.b32.xlu1 %v930_v49, %s3410_s28 }
 0xd39   :  { %1069 = vrot.lane.b32.xlu1 %v3806_v4, %s3410_s28  ;;  %v2970_v4 = vpack.c.bf16 %v1114_v8, %v1112_v7  ;;  %v1068_v7 = vsel %vm1041_vm4, %v3789_v14, %v3751_v6  ;;  %v1099_v6 = vld [vmem:[%s4533_s5 + $0x38] sm:$0xff] }
 0xd3a   :  { %v1158_v22 = vrot.slane %v1068_v7, 2  ;;  %v2984_v31 = vpack.c.bf16 %v1099_v6, %v1097_v21 }
 0xda3   :  { %v934_v57 = vpop.permute.xlu1 %933 }
 0xda4   :  { %2683 = vmatmul.mubr.msk.f32.vlgmr.msra.gmra.mrb[6].mxu1 %vm222_vm3, %v934_v57 }
 0xda5   :  { %1429 = vmatprep.mubr.f32.mxu1 %v3403_v17 }
 0xe77   :  { %v1003_v53 = vpop.f32.mrb[6].mxu1 }
 0xe78   :  { %v1009_v54 = vrot.slane %v1003_v53, 2  ;;  %v1005_v56 = vpop.f32.mrb[7].mxu1  ;;  %v1129_v53 = vld [vmem:[%s4534_s6 + $0x28] sm:$0xff] }
 0xe79   :  { %v1018_v61 = vadd.f32 %v3666_v19, %v1005_v56  ;;  %v1072_v19 = vrot.slane %v3718_v39, 2  ;;  %v1131_v56 = vld [vmem:[%s4534_s6 + $0x38] sm:$0xff] }
 0xe7a   :  { %v1011_v58 = vadd.f32 %v1009_v54, %v3772_v40  ;;  %v1087_v40 = vrot.slane %v3675_v36, 2  ;;  %v1110_v36 = vld [vmem:[%s4533_s5 + $0x90] sm:$0xff] }
 0xe7b   :  { %v1020_v25 = vrot.slane %v1018_v61, 2  ;;  %v2966_v27 = vpack.c.bf16 %v1110_v36, %v1108_v20  ;;  %v1133_v61 = vld [vmem:[%s4534_s6 + $0x48] sm:$0xff]  ;;  %v1078_v20 = vpop.permute.xlu1 %1077 }
 0xe7c   :  { %v2684_v59 = vmul.f32 -1.442695, %v1011_v58  ;;  %v1128_v58 = vld [vmem:[%s4534_s6 + $0x20] sm:$0xff] }
 0xe7e   :  { %3323 = vpow2.f32 %v2684_v59  ;;  %v1130_v59 = vld [vmem:[%s4534_s6 + $0x30] sm:$0xff] }
 0xe7f   :  { %v1070_v36 = vpop.permute.xlu1 %1069 }
 0xe88   :  { %v3324_v13 = vpop.eup %3323 }
 0xe89   :  { %v1015_v15 = vadd.f32 1.0, %v3324_v13  ;;  %v3922_v13 = vpack.c.bf16 %v1131_v56, %v1129_v53 }
 0xe8b   :  { %3325 = vrcp.f32 %v1015_v15  ;;  %v3924_v15 = vpack.c.bf16 %v1130_v59, %v1128_v58 }
 0xe95   :  { %v3326_v63 = vpop.eup %3325 }
 0xe96   :  { %v1022_v11 = vmul.f32 %v3326_v63, %v1020_v25  ;;  %v1033_v2 = vmul.f32 %v3326_v63, %v1031_v60  ;;  %v1025_v44 = vsub.f32 1.0, %v3326_v63  ;;  %v1135_v25 = vld [vmem:[%s4534_s6 + $0x58] sm:$0xff]  ;;  %v1132_v60 = vld [vmem:[%s4534_s6 + $0x40] sm:$0xff]  ;;  %v1134_v63 = vld [vmem:[%s4534_s6 + $0x50] sm:$0xff] }
 0xe98   :  { %v1023_v0 = vadd.f32 %v1022_v11, %v3779_v52  ;;  %v1111_v52 = vld [vmem:[%s4533_s5 + $0x98] sm:$0xff]  ;;  %v3941_v11 = vpack.c.bf16 %v1135_v25, %v1133_v61  ;;  %v1104_v25 = vld [vmem:[%s4533_s5 + $0x60] sm:$0xff] }
 0xe99   :  { %v2964_v26 = vpack.c.bf16 %v1111_v52, %v1109_v18 }
 0xe9a   :  { %3327 = vtanh.f32 %v1023_v0  ;;  %v1137_v0 = vld [vmem:[%s4534_s6 + $0x68] sm:$0xff] }
 0xe9b   :  { %2965 = vmatprep.subr.bf16.mxu0 %v2964_v26 }
 0xe9c   :  { %2967 = vmatpush1.bf16.msra.mxu0 %v2966_v27 }
 0xea4   :  { %v3328_v12 = vpop.eup %3327 }
 0xea5   :  { %1027 = vrot.lane.b32.xlu0 %v3328_v12, %s3410_s28  ;;  %v1139_v12 = vld [vmem:[%s4534_s6 + $0x78] sm:$0xff] }
 0xea9   :  { %1080 = vrot.lane.b32.xlu0 %v519_v33, %s3410_s28  ;;  %v1113_v33 = vld [vmem:[%s4533_s5 + $0xa8] sm:$0xff] }
 0xeaa   :  { %v2968_v30 = vpack.c.bf16 %v1115_v10, %v1113_v33 }
 0xeac   :  { %2969 = vmatprep.subr.bf16.mxu0 %v2968_v30 }
 0xead   :  { %1088 = vrot.lane.b32.xlu0 %v1087_v40, %s3410_s28  ;;  %2971 = vmatpush1.bf16.msra.mxu0 %v2970_v4  ;;  %v1136_v40 = vld [vmem:[%s4534_s6 + $0x60] sm:$0xff] }
 0xeae   :  { %2973 = vmatprep.subr.bf16.mxu0 %v2972_v16 }
 0xeb1   :  { %1073 = vrot.lane.b32.xlu0 %v1072_v19, %s3410_s28  ;;  %2975 = vmatpush1.bf16.msra.mxu0 %v2974_v24  ;;  %v3961_v19 = vpack.c.bf16 %v1139_v12, %v1137_v0 }
 0xeb2   :  { %2977 = vmatprep.subr.bf16.mxu0 %v2976_v32  ;;  %v1096_v32 = vld [vmem:[%s4533_s5 + $0x20] sm:$0xff] }
 0xeb5   :  { %1054 = vrot.lane.b32.xlu0 %v927_v45, %s3410_s28  ;;  %2979 = vmatpush1.bf16.msra.mxu0 %v2978_v35  ;;  %v1127_v45 = vld [vmem:[%s4534_s6 + $0x18] sm:$0xff] }
 0xeb6   :  { %2981 = vmatprep.subr.bf16.mxu0 %v2980_v42  ;;  %v3904_v49 = vpack.c.bf16 %v1127_v45, %v1125_v43  ;;  %v2986_v43 = vpack.c.bf16 %v1098_v5, %v1096_v32  ;;  %v1100_v45 = vld [vmem:[%s4533_s5 + $0x40] sm:$0xff] }
 0xeb7   :  { %v2990_v56 = vpack.c.bf16 %v1102_v46, %v1100_v45 }
 0xeb8   :  { %2997 = vmatprep.subr.bf16.mxu1 %v3904_v49 }
 0xeb9   :  { %1062 = vrot.lane.b32.xlu0 %v1061_v23, %s3410_s28  ;;  %2999 = vmatpush1.bf16.msra.mxu1 %v3906_v55 }
 0xeba   :  { %3001 = vmatprep.subr.bf16.mxu1 %v3922_v13 }
 0xebd   :  { %1047 = vrot.lane.b32.xlu0 %v1046_v28, %s3410_s28  ;;  %3003 = vmatpush1.bf16.msra.mxu1 %v3924_v15  ;;  %v2982_v28 = vpack.c.bf16 %v1094_v9, %v1092_v3 }
 0xebe   :  { %3005 = vmatprep.subr.bf16.mxu1 %v3941_v11 }
 0xf17   :  { %v1028_v51 = vpop.permute.xlu0 %1027 }
 0xf18   :  { %v1030_v57 = vmul.f32 %v1028_v51, %v1025_v44  ;;  %v2988_v44 = vpack.c.bf16 %v1103_v41, %v1101_v38  ;;  %v1107_v51 = vld [vmem:[%s4533_s5 + $0x78] sm:$0xff] }
 0xf19   :  { %v2992_v61 = vpack.c.bf16 %v1107_v51, %v1105_v48 }
 0xf1a   :  { %v1034_v54 = vadd.f32 %v1033_v2, %v1030_v57  ;;  %v3943_v2 = vpack.c.bf16 %v1134_v63, %v1132_v60  ;;  %v1106_v60 = vld [vmem:[%s4533_s5 + $0x70] sm:$0xff] }
 0xf1c   :  { %1084 = vrot.lane.b32.xlu1 %v1034_v54, %s3410_s28  ;;  %3007 = vmatpush1.bf16.msra.mxu1 %v3943_v2  ;;  %v1037_v52 = vrot.slane %v1034_v54, 6 }
 0xf1d   :  { %3009 = vmatprep.subr.bf16.mxu1 %v3961_v19 }
 0xf20   :  { %1051 = vrot.lane.b32.xlu1 %v3718_v39, %s3410_s28  ;;  %v1138_v39 = vld [vmem:[%s4534_s6 + $0x70] sm:$0xff] }
 0xf21   :  { %v3963_v18 = vpack.c.bf16 %v1138_v39, %v1136_v40  ;;  %v2994_v39 = vpack.c.bf16 %v1106_v60, %v1104_v25 }
 0xf23   :  { %3011 = vmatpush1.bf16.msra.mxu1 %v3963_v18 }
 0xf24   :  { %1058 = vrot.lane.b32.xlu1 %v3741_v1, %s3410_s28  ;;  %3013 = vmatprep.subr.bf16.mxu1 %v3904_v49 }
 0xf26   :  { %1430 = vmatmul.mubr.f32.vlgmr.msra.gmra.mrb[8].mxu1 %v3403_v17 }
 0xf27   :  { %3015 = vmatpush1.bf16.msra.mxu1 %v3906_v55  ;;  %1524 = vmatprep.mubr.f32.mxu1 %v3403_v17 }
 0xf28   :  { %1043 = vrot.lane.b32.xlu1 %v3697_v62, %s3410_s28  ;;  %3017 = vmatprep.subr.bf16.mxu1 %v3922_v13  ;;  %v1081_v62 = vpop.permute.xlu0 %1080 }
 0xf29   :  { %v3984_v33 = vsel %vm1041_vm4, %v1078_v20, %v1081_v62 }
 0xf2a   :  { %v1152_v4 = vrot.slane %v3984_v33, 2 }
 0xf2b   :  { %3019 = vmatpush1.bf16.msra.mxu1 %v3924_v15 }
 0xf2c   :  { %1038 = vrot.lane.b32.xlu1 %v1037_v52, %s3410_s28  ;;  %3021 = vmatprep.subr.bf16.mxu1 %v3941_v11  ;;  %v1089_v1 = vpop.permute.xlu0 %1088 }
 0xf2f   :  { %3023 = vmatpush1.bf16.msra.mxu1 %v3943_v2 }
 0xf30   :  { %3025 = vmatprep.subr.bf16.mxu1 %v3961_v19  ;;  %v1074_v26 = vpop.permute.xlu0 %1073 }
 0xf31   :  { %v3987_v10 = vsel %vm1041_vm4, %v1070_v36, %v1074_v26 }
 0xf32   :  { %v1155_v14 = vrot.slane %v3987_v10, 6 }
 0xf33   :  { %3027 = vmatpush1.bf16.msra.mxu1 %v3963_v18 }
 0xf34   :  { %3045 = vmatprep.subr.bf16.mxu1 %v3904_v49  ;;  %v1055_v27 = vpop.permute.xlu0 %1054 }
 0xf38   :  { %v1063_v34 = vpop.permute.xlu0 %1062 }
 0xf3c   :  { %v1048_v53 = vpop.permute.xlu0 %1047 }
 0xf8e   :  { %v1085_v30 = vpop.permute.xlu1 %1084 }
 0xf8f   :  { %v3993_v8 = vsel %vm1041_vm4, %v1085_v30, %v1089_v1 }
 0xf90   :  { %v1149_v16 = vrot.slane %v3993_v8, 6 }
 0xf92   :  { %v1172_v23 = vsel %vm96_vm0, %v1149_v16, %v1152_v4  ;;  %v1052_v24 = vpop.permute.xlu1 %1051 }
 0xf93   :  { %v1173_v29 = vsel %vm98_vm1, %v1172_v23, %v1155_v14  ;;  %v1057_v58 = vsel %vm1041_vm4, %v1052_v24, %v1055_v27 }
 0xf94   :  { %v1174_v35 = vsel %vm100_vm2, %v1173_v29, %v1158_v22  ;;  %v1164_v12 = vrot.slane %v1057_v58, 2 }
 0xf95   :  { %2685 = vmatmul.mubr.msk.f32.vlgmr.msra.gmra.mrb[8].mxu0 %vm222_vm3, %v1174_v35 }
 0xf96   :  { %v1059_v42 = vpop.permute.xlu1 %1058  ;;  %2983 = vmatpush1.bf16.msra.mxu0 %v2982_v28  ;;  %1254 = vmatprep.mubr.f32.mxu0 %v3403_v17 }
 0xf97   :  { %2985 = vmatprep.subr.bf16.mxu0 %v2984_v31  ;;  %v1065_v57 = vsel %vm1041_vm4, %v1059_v42, %v1063_v34 }
 0xf98   :  { %v1161_v63 = vrot.slane %v1065_v57, 6 }
 0xf9a   :  { %v1044_v54 = vpop.permute.xlu1 %1043  ;;  %2987 = vmatpush1.bf16.msra.mxu0 %v2986_v43  ;;  %v1175_v62 = vsel %vm96_vm0, %v1161_v63, %v1164_v12 }
 0xf9b   :  { %v1050_v59 = vsel %vm1041_vm4, %v1044_v54, %v1048_v53  ;;  %2989 = vmatprep.subr.bf16.mxu0 %v2988_v44 }
 0xf9c   :  { %v1167_v0 = vrot.slane %v1050_v59, 6 }
 0xf9e   :  { %v1039_v40 = vpop.permute.xlu1 %1038  ;;  %2991 = vmatpush1.bf16.msra.mxu0 %v2990_v56  ;;  %v1176_v26 = vsel %vm98_vm1, %v1175_v62, %v1167_v0 }
 0xf9f   :  { %v1042_v52 = vsel %vm1041_vm4, %v3679_v37, %v1039_v40  ;;  %2993 = vmatprep.subr.bf16.mxu0 %v2992_v61  ;;  %v1145_v37 = vsel %vm96_vm0, %v1068_v7, %v3987_v10  ;;  %v1140_v7 = vld [vmem:[%s4535_s7] sm:$0x3] }
 0xfa0   :  { %v1142_v1 = vsel %vm96_vm0, %v1042_v52, %v1050_v59  ;;  %v1170_v20 = vrot.slane %v1042_v52, 2  ;;  %v1146_v3 = vsel %vm98_vm1, %v1145_v37, %v3984_v33  ;;  %v1352_v14 = vrot.slane %v1140_v7, %v3632_v50 }
 0xfa1   :  { %v1143_v27 = vsel %vm98_vm1, %v1142_v1, %v1057_v58  ;;  %v1147_v9 = vsel %vm100_vm2, %v1146_v3, %v3993_v8  ;;  %v1348_v8 = vrot.slane %v1140_v7, %v3626_v47  ;;  %v4092_v47 = vld [vmem:[%s4536_s8] ss:$0 sm:$0xff]  ;;  %s2661_s8 = sshll.u32 %s3421_s21, 4  ;;  %s2662_s8 = int_to_ptr.vmem [resolvable:$true] %s2661_s8 }
 0xfa2   :  { %v1177_v36 = vsel %vm100_vm2, %v1176_v26, %v1170_v20  ;;  %2995 = vmatpush1.bf16.msra.mxu0 %v2994_v39  ;;  %v1144_v30 = vsel %vm100_vm2, %v1143_v27, %v1065_v57  ;;  %p3382_p1 = scmp.lt.s32.totalorder %s2662_s8, %s2662_s8 }
 0xfa3   :  { %2686 = vmatmul.mubr.msk.f32.gmra.mrb[10].mxu0 %vm222_vm3, %v1177_v36  ;;  %3029 = vmatprep.subr.bf16.mxu0 %v3904_v49 }
 0xfa4   :  { %1331 = vmatprep.mubr.f32.mxu0 %v3403_v17 }
 0xfa7   :  { %2687 = vmatmul.mubr.msk.f32.vlgmr.msra.gmra.mrb[8].mxu0 %vm222_vm3, %v1144_v30 }
 0xfa8   :  { %1337 = vmatprep.mubr.f32.mxu0 %v3403_v17  ;;  %3031 = vmatpush1.bf16.msra.mxu0 %v3906_v55 }
 0xfa9   :  { %3033 = vmatprep.subr.bf16.mxu0 %v3922_v13 }
 0xfab   :  { %2688 = vmatmul.mubr.msk.f32.gmra.mrb[10].mxu0 %vm222_vm3, %v1147_v9 }
 0xfac   :  { %3035 = vmatpush1.bf16.msra.mxu0 %v3924_v15  ;;  %1628 = vmatprep.mubr.f32.mxu0 %v3403_v17 }
 0xfad   :  { %3037 = vmatprep.subr.bf16.mxu0 %v3941_v11 }
 0xfb0   :  { %3039 = vmatpush1.bf16.msra.mxu0 %v3943_v2 }
 0xfb1   :  { %3041 = vmatprep.subr.bf16.mxu0 %v3961_v19 }
 0xfb4   :  { %3043 = vmatpush1.bf16.msra.mxu0 %v3963_v18 }
 0xfb5   :  { %3061 = vmatprep.subr.bf16.mxu0 %v3904_v49 }
 0xff9   :  { %v1431_v33 = vpop.f32.mrb[8].mxu1 }
 0xffa   :  { %v1433_v10 = vpop.f32.mrb[9].mxu1 }
 0xffb   :  { %v1443_v5 = vadd.f32 %v4092_v47, %v1433_v10 }
0x107a   :  { %v1333_v4 = vpop.f32.mrb[8].mxu0 }
0x107b   :  { %v4081_v16 = vadd.f32 %v1348_v8, %v1333_v4  ;;  %v1335_v21 = vpop.f32.mrb[9].mxu0 }
0x107c   :  { %v4095_v50 = vadd.f32 %v1352_v14, %v1335_v21 }
0x107d   :  { %v1436_v6 = vadd.f32 %v1431_v33, %v4081_v16 }
0x107e   :  { %v1339_v22 = vpop.f32.mrb[10].mxu0 }
0x107f   :  { %v2690_v23 = vmul.f32 -1.442695, %v1436_v6  ;;  %v4085_v24 = vadd.f32 %v1348_v8, %v1339_v22  ;;  %v1341_v28 = vpop.f32.mrb[11].mxu0 }
0x1080   :  { %v4087_v29 = vadd.f32 %v1352_v14, %v1341_v28 }
0x1081   :  { %3329 = vpow2.f32 %v2690_v23 }
0x108b   :  { %v3330_v31 = vpop.eup %3329 }
0x108c   :  { %v1440_v32 = vadd.f32 1.0, %v3330_v31 }
0x108e   :  { %3331 = vrcp.f32 %v1440_v32 }
0x1098   :  { %v3332_v34 = vpop.eup %3331 }
0x1099   :  { %v1444_v35 = vmul.f32 %v3332_v34, %v1443_v5  ;;  %v1447_v42 = vsub.f32 1.0, %v3332_v34  ;;  %v1453_v44 = vmul.f32 0.0, %v3332_v34 }
0x109b   :  { %v1445_v38 = vadd.f32 %v1444_v35, %v4095_v50 }
0x109d   :  { %3333 = vtanh.f32 %v1445_v38 }
0x10a7   :  { %v3334_v41 = vpop.eup %3333 }
0x10a8   :  { %1449 = vrot.lane.b32.xlu0 %v3334_v41, %s3410_s28 }
0x111a   :  { %v1450_v43 = vpop.permute.xlu0 %1449 }
0x111b   :  { %v1452_v45 = vmul.f32 %v1450_v43, %v1447_v42 }
0x111d   :  { %v4099_v46 = vadd.f32 %v1453_v44, %v1452_v45 }
0x111f   :  { %1456 = vrot.lane.b32.xlu1 %v4099_v46, %s3410_s28  ;;  %v1554_v60 = vrot.slane %v4099_v46, 6 }
0x1191   :  { %v4103_v48 = vpop.permute.xlu1 %1456 }
0x1192   :  { %2691 = vmatmul.mubr.msk.f32.vlgmr.msra.gmra.mrb[10].mxu1 %vm222_vm3, %v4103_v48 }
0x1193   :  { %3047 = vmatpush1.bf16.msra.mxu1 %v3906_v55  ;;  %1732 = vmatprep.mubr.f32.mxu1 %v3403_v17 }
0x1194   :  { %3049 = vmatprep.subr.bf16.mxu1 %v3922_v13 }
0x1197   :  { %3051 = vmatpush1.bf16.msra.mxu1 %v3924_v15 }
0x1198   :  { %3053 = vmatprep.subr.bf16.mxu1 %v3941_v11 }
0x119b   :  { %3055 = vmatpush1.bf16.msra.mxu1 %v3943_v2 }
0x119c   :  { %3057 = vmatprep.subr.bf16.mxu1 %v3961_v19 }
0x119f   :  { %3059 = vmatpush1.bf16.msra.mxu1 %v3963_v18 }
0x11a0   :  { %3077 = vmatprep.subr.bf16.mxu1 %v3904_v49 }
0x1265   :  { %v1526_v51 = vpop.f32.mrb[10].mxu1 }
0x1266   :  { %v1532_v57 = vrot.slane %v1526_v51, 6  ;;  %v1528_v53 = vpop.f32.mrb[11].mxu1 }
0x1267   :  { %v1541_v61 = vadd.f32 %v4092_v47, %v1528_v53 }
0x1268   :  { %v1534_v54 = vadd.f32 %v1532_v57, %v4081_v16 }
0x1269   :  { %v1543_v25 = vrot.slane %v1541_v61, 6 }
0x126a   :  { %v2692_v56 = vmul.f32 -1.442695, %v1534_v54 }
0x126c   :  { %3335 = vpow2.f32 %v2692_v56 }
0x1276   :  { %v3336_v58 = vpop.eup %3335 }
0x1277   :  { %v1538_v59 = vadd.f32 1.0, %v3336_v58 }
0x1279   :  { %3337 = vrcp.f32 %v1538_v59 }
0x1283   :  { %v3338_v63 = vpop.eup %3337 }
0x1284   :  { %v1545_v0 = vmul.f32 %v3338_v63, %v1543_v25  ;;  %v1556_v12 = vmul.f32 %v3338_v63, %v1554_v60  ;;  %v1548_v52 = vsub.f32 1.0, %v3338_v63 }
0x1286   :  { %v1546_v40 = vadd.f32 %v1545_v0, %v4095_v50 }
0x1288   :  { %3339 = vtanh.f32 %v1546_v40 }
0x1292   :  { %v3340_v39 = vpop.eup %3339 }
0x1293   :  { %1550 = vrot.lane.b32.xlu0 %v3340_v39, %s3410_s28 }
0x1305   :  { %v1551_v62 = vpop.permute.xlu0 %1550 }
0x1306   :  { %v1553_v1 = vmul.f32 %v1551_v62, %v1548_v52 }
0x1308   :  { %v4121_v20 = vadd.f32 %v1556_v12, %v1553_v1 }
0x130a   :  { %v1559_v26 = vrot.slane %v4121_v20, 2  ;;  %v1658_v23 = vrot.slane %v4121_v20, 6 }
0x130c   :  { %1560 = vrot.lane.b32.xlu1 %v1559_v26, %s3410_s28 }
0x137e   :  { %v1561_v36 = vpop.permute.xlu1 %1560 }
0x137f   :  { %2693 = vmatmul.mubr.msk.f32.vlgmr.msra.gmra.mrb[12].mxu0 %vm222_vm3, %v1561_v36 }
0x1380   :  { %3063 = vmatpush1.bf16.msra.mxu0 %v3906_v55  ;;  %1836 = vmatprep.mubr.f32.mxu0 %v3403_v17 }
0x1381   :  { %3065 = vmatprep.subr.bf16.mxu0 %v3922_v13 }
0x1384   :  { %3067 = vmatpush1.bf16.msra.mxu0 %v3924_v15 }
0x1385   :  { %3069 = vmatprep.subr.bf16.mxu0 %v3941_v11 }
0x1388   :  { %3071 = vmatpush1.bf16.msra.mxu0 %v3943_v2 }
0x1389   :  { %3073 = vmatprep.subr.bf16.mxu0 %v3961_v19 }
0x138c   :  { %3075 = vmatpush1.bf16.msra.mxu0 %v3963_v18 }
0x138d   :  { %3093 = vmatprep.subr.bf16.mxu0 %v3904_v49 }
0x1452   :  { %v1630_v27 = vpop.f32.mrb[12].mxu0 }
0x1453   :  { %v1636_v37 = vrot.slane %v1630_v27, 4  ;;  %v1632_v30 = vpop.f32.mrb[13].mxu0 }
0x1454   :  { %v1645_v7 = vadd.f32 %v4092_v47, %v1632_v30 }
0x1455   :  { %v1638_v3 = vadd.f32 %v1636_v37, %v4081_v16 }
0x1456   :  { %v1647_v8 = vrot.slane %v1645_v7, 4 }
0x1457   :  { %v2694_v9 = vmul.f32 -1.442695, %v1638_v3 }
0x1459   :  { %3341 = vpow2.f32 %v2694_v9 }
0x1463   :  { %v3342_v33 = vpop.eup %3341 }
0x1464   :  { %v1642_v10 = vadd.f32 1.0, %v3342_v33 }
0x1466   :  { %3343 = vrcp.f32 %v1642_v10 }
0x1470   :  { %v3344_v4 = vpop.eup %3343 }
0x1471   :  { %v1649_v21 = vmul.f32 %v3344_v4, %v1647_v8  ;;  %v1652_v22 = vsub.f32 1.0, %v3344_v4  ;;  %v1660_v31 = vmul.f32 %v3344_v4, %v1658_v23 }
0x1473   :  { %v1650_v6 = vadd.f32 %v1649_v21, %v4095_v50 }
0x1475   :  { %3345 = vtanh.f32 %v1650_v6 }
0x147f   :  { %v3346_v14 = vpop.eup %3345 }
0x1480   :  { %1654 = vrot.lane.b32.xlu0 %v3346_v14, %s3410_s28 }
0x14f2   :  { %v1655_v28 = vpop.permute.xlu0 %1654 }
0x14f3   :  { %v1657_v32 = vmul.f32 %v1655_v28, %v1652_v22 }
0x14f5   :  { %v4142_v5 = vadd.f32 %v1660_v31, %v1657_v32 }
0x14f7   :  { %v1663_v34 = vrot.slane %v4142_v5, 4  ;;  %v1762_v61 = vrot.slane %v4142_v5, 6 }
0x14f9   :  { %1664 = vrot.lane.b32.xlu1 %v1663_v34, %s3410_s28 }
0x156b   :  { %v1665_v35 = vpop.permute.xlu1 %1664 }
0x156c   :  { %2695 = vmatmul.mubr.msk.f32.vlgmr.msra.gmra.mrb[12].mxu1 %vm222_vm3, %v1665_v35 }
0x156d   :  { %3079 = vmatpush1.bf16.msra.mxu1 %v3906_v55  ;;  %1932 = vmatprep.mubr.f32.mxu1 %v3403_v17 }
0x156e   :  { %3081 = vmatprep.subr.bf16.mxu1 %v3922_v13 }
0x1571   :  { %3083 = vmatpush1.bf16.msra.mxu1 %v3924_v15 }
0x1572   :  { %3085 = vmatprep.subr.bf16.mxu1 %v3941_v11 }
0x1575   :  { %3087 = vmatpush1.bf16.msra.mxu1 %v3943_v2 }
0x1576   :  { %3089 = vmatprep.subr.bf16.mxu1 %v3961_v19 }
0x1579   :  { %3091 = vmatpush1.bf16.msra.mxu1 %v3963_v18 }
0x157a   :  { %3109 = vmatprep.subr.bf16.mxu1 %v3904_v49 }
0x163f   :  { %v1734_v38 = vpop.f32.mrb[12].mxu1 }
0x1640   :  { %v1740_v41 = vrot.slane %v1734_v38, 2  ;;  %v1736_v42 = vpop.f32.mrb[13].mxu1 }
0x1641   :  { %v1749_v57 = vadd.f32 %v4092_v47, %v1736_v42 }
0x1642   :  { %v1742_v43 = vadd.f32 %v1740_v41, %v4081_v16 }
0x1643   :  { %v1751_v53 = vrot.slane %v1749_v57, 2 }
0x1644   :  { %v2696_v44 = vmul.f32 -1.442695, %v1742_v43 }
0x1646   :  { %3347 = vpow2.f32 %v2696_v44 }
0x1650   :  { %v3348_v45 = vpop.eup %3347 }
0x1651   :  { %v1746_v51 = vadd.f32 1.0, %v3348_v45 }
0x1653   :  { %3349 = vrcp.f32 %v1746_v51 }
0x165d   :  { %v3350_v54 = vpop.eup %3349 }
0x165e   :  { %v1753_v56 = vmul.f32 %v3350_v54, %v1751_v53  ;;  %v1756_v49 = vsub.f32 1.0, %v3350_v54  ;;  %v1764_v25 = vmul.f32 %v3350_v54, %v1762_v61 }
0x1660   :  { %v1754_v58 = vadd.f32 %v1753_v56, %v4095_v50 }
0x1662   :  { %3351 = vtanh.f32 %v1754_v58 }
0x166c   :  { %v3352_v59 = vpop.eup %3351 }
0x166d   :  { %1758 = vrot.lane.b32.xlu0 %v3352_v59, %s3410_s28 }
0x16df   :  { %v1759_v16 = vpop.permute.xlu0 %1758 }
0x16e0   :  { %v1761_v60 = vmul.f32 %v1759_v16, %v1756_v49 }
0x16e2   :  { %v4161_v63 = vadd.f32 %v1764_v25, %v1761_v60 }
0x16e4   :  { %v1767_v0 = vrot.slane %v4161_v63, 6 }
0x16e6   :  { %1768 = vrot.lane.b32.xlu1 %v1767_v0, %s3410_s28 }
0x1758   :  { %v4165_v12 = vpop.permute.xlu1 %1768 }
0x1759   :  { %2697 = vmatmul.mubr.msk.f32.vlgmr.msra.gmra.mrb[14].mxu0 %vm222_vm3, %v4165_v12 }
0x175a   :  { %3095 = vmatpush1.bf16.msra.mxu0 %v3906_v55  ;;  %2036 = vmatprep.mubr.f32.mxu0 %v3403_v17 }
0x175b   :  { %3097 = vmatprep.subr.bf16.mxu0 %v3922_v13 }
0x175e   :  { %3099 = vmatpush1.bf16.msra.mxu0 %v3924_v15 }
0x175f   :  { %3101 = vmatprep.subr.bf16.mxu0 %v3941_v11 }
0x1762   :  { %3103 = vmatpush1.bf16.msra.mxu0 %v3943_v2 }
0x1763   :  { %3105 = vmatprep.subr.bf16.mxu0 %v3961_v19 }
0x1766   :  { %3107 = vmatpush1.bf16.msra.mxu0 %v3963_v18 }
0x182c   :  { %v1838_v50 = vpop.f32.mrb[14].mxu0 }
0x182d   :  { %v1843_v40 = vadd.f32 %v1838_v50, %v4085_v24  ;;  %v1840_v39 = vpop.f32.mrb[15].mxu0 }
0x182e   :  { %v1850_v26 = vadd.f32 %v4092_v47, %v1840_v39 }
0x182f   :  { %v2698_v52 = vmul.f32 -1.442695, %v1843_v40 }
0x1831   :  { %3353 = vpow2.f32 %v2698_v52 }
0x183b   :  { %v3354_v62 = vpop.eup %3353 }
0x183c   :  { %v1847_v1 = vadd.f32 1.0, %v3354_v62 }
0x183e   :  { %3355 = vrcp.f32 %v1847_v1 }
0x1848   :  { %v3356_v36 = vpop.eup %3355 }
0x1849   :  { %v1851_v27 = vmul.f32 %v3356_v36, %v1850_v26  ;;  %v1854_v3 = vsub.f32 1.0, %v3356_v36  ;;  %v1861_v33 = vmul.f32 %v3356_v36, %v1767_v0 }
0x184b   :  { %v1852_v37 = vadd.f32 %v1851_v27, %v4087_v29 }
0x184d   :  { %3357 = vtanh.f32 %v1852_v37 }
0x1857   :  { %v3358_v30 = vpop.eup %3357 }
0x1858   :  { %1856 = vrot.lane.b32.xlu0 %v3358_v30, %s3410_s28 }
0x18ca   :  { %v1857_v9 = vpop.permute.xlu0 %1856 }
0x18cb   :  { %v1859_v10 = vmul.f32 %v1857_v9, %v1854_v3 }
0x18cd   :  { %v4181_v7 = vadd.f32 %v1861_v33, %v1859_v10 }
0x18cf   :  { %1864 = vrot.lane.b32.xlu1 %v4181_v7, %s3410_s28  ;;  %v2199_v1 = vrot.slane %v4181_v7, 2 }
0x18d1   :  { %v3241_v26 = vpack.i.bf16 %v2199_v1, %v4161_v63  ;;  %v2298_v1 = vld [vmem:[%s4537_s9 + $0x110] sm:$0xff] }
0x1941   :  { %v4185_v8 = vpop.permute.xlu1 %1864 }
0x1942   :  { %2699 = vmatmul.mubr.msk.f32.vlgmr.msra.gmra.mrb[14].mxu1 %vm222_vm3, %v4185_v8 }
0x1943   :  { %3111 = vmatpush1.bf16.msra.mxu1 %v3906_v55  ;;  %2140 = vmatprep.mubr.f32.mxu1 %v3403_v17 }
0x1944   :  { %3113 = vmatprep.subr.bf16.mxu1 %v3922_v13 }
0x1947   :  { %3115 = vmatpush1.bf16.msra.mxu1 %v3924_v15 }
0x1948   :  { %3117 = vmatprep.subr.bf16.mxu1 %v3941_v11  ;;  %v1962_v11 = vrot.slane %v4181_v7, 6 }
0x194b   :  { %3119 = vmatpush1.bf16.msra.mxu1 %v3943_v2 }
0x194c   :  { %3121 = vmatprep.subr.bf16.mxu1 %v3961_v19 }
0x194f   :  { %3123 = vmatpush1.bf16.msra.mxu1 %v3963_v18 }
0x1a15   :  { %v1934_v4 = vpop.f32.mrb[14].mxu1 }
0x1a16   :  { %v1940_v21 = vrot.slane %v1934_v4, 6  ;;  %v1936_v6 = vpop.f32.mrb[15].mxu1 }
0x1a17   :  { %v1949_v13 = vadd.f32 %v4092_v47, %v1936_v6 }
0x1a18   :  { %v1942_v14 = vadd.f32 %v1940_v21, %v4085_v24 }
0x1a19   :  { %v1951_v15 = vrot.slane %v1949_v13, 6  ;;  %v2210_v13 = vrot.slane %v4142_v5, 2 }
0x1a1a   :  { %v2700_v55 = vmul.f32 -1.442695, %v1942_v14 }
0x1a1c   :  { %3359 = vpow2.f32 %v2700_v55 }
0x1a26   :  { %v3360_v22 = vpop.eup %3359 }
0x1a27   :  { %v1946_v28 = vadd.f32 1.0, %v3360_v22 }
0x1a29   :  { %3361 = vrcp.f32 %v1946_v28 }
0x1a33   :  { %v3362_v2 = vpop.eup %3361 }
0x1a34   :  { %v1953_v31 = vmul.f32 %v3362_v2, %v1951_v15  ;;  %v1964_v19 = vmul.f32 %v3362_v2, %v1962_v11  ;;  %v1956_v34 = vsub.f32 1.0, %v3362_v2 }
0x1a36   :  { %v1954_v18 = vadd.f32 %v1953_v31, %v4087_v29 }
0x1a38   :  { %3363 = vtanh.f32 %v1954_v18  ;;  %v2225_v18 = vrot.slane %v4099_v46, 2 }
0x1a42   :  { %v3364_v32 = vpop.eup %3363 }
0x1a43   :  { %1958 = vrot.lane.b32.xlu0 %v3364_v32, %s3410_s28 }
0x1ab5   :  { %v1959_v35 = vpop.permute.xlu0 %1958 }
0x1ab6   :  { %v1961_v38 = vmul.f32 %v1959_v35, %v1956_v34 }
0x1ab8   :  { %v4202_v41 = vadd.f32 %v1964_v19, %v1961_v38 }
0x1aba   :  { %v1967_v42 = vrot.slane %v4202_v41, 2  ;;  %v2066_v0 = vrot.slane %v4202_v41, 6 }
0x1abc   :  { %1968 = vrot.lane.b32.xlu1 %v1967_v42, %s3410_s28 }
0x1b2e   :  { %v1969_v43 = vpop.permute.xlu1 %1968 }
0x1b2f   :  { %2701 = vmatmul.mubr.msk.f32.vlgmr.msra.gmra.mrb[16].mxu0 %vm222_vm3, %v1969_v43 }
0x1c02   :  { %v2038_v44 = vpop.f32.mrb[16].mxu0 }
0x1c03   :  { %v2044_v45 = vrot.slane %v2038_v44, 4  ;;  %v2040_v51 = vpop.f32.mrb[17].mxu0  ;;  %v2265_v44 = vld [vmem:[%s4537_s9 + $0x8] sm:$0xff] }
0x1c04   :  { %v2053_v58 = vadd.f32 %v4092_v47, %v2040_v51  ;;  %v2313_v51 = vld [vmem:[%s4537_s9 + $0x188] sm:$0xff] }
0x1c05   :  { %v2046_v57 = vadd.f32 %v2044_v45, %v4085_v24  ;;  %v2312_v45 = vld [vmem:[%s4537_s9 + $0x180] sm:$0xff] }
0x1c06   :  { %v2055_v59 = vrot.slane %v2053_v58, 4  ;;  %v2296_v58 = vld [vmem:[%s4537_s9 + $0x100] sm:$0xff] }
0x1c07   :  { %v2702_v53 = vmul.f32 -1.442695, %v2046_v57 }
0x1c09   :  { %3365 = vpow2.f32 %v2702_v53  ;;  %v3261_v53 = vpack.i.bf16 %v2066_v0, %v4142_v5  ;;  %v2283_v5 = vld [vmem:[%s4537_s9 + $0x98] sm:$0xff] }
0x1c13   :  { %v3366_v54 = vpop.eup %3365 }
0x1c14   :  { %v2050_v56 = vadd.f32 1.0, %v3366_v54 }
0x1c16   :  { %3367 = vrcp.f32 %v2050_v56  ;;  %v3156_v56 = vpack.c.bf16 %v2313_v51, %v2312_v45  ;;  %v2291_v45 = vld [vmem:[%s4537_s9 + $0xd8] sm:$0xff] }
0x1c18   :  { %3157 = vmatprep.subr.bf16.mxu1 %v3156_v56  ;;  %v2322_v56 = vld [vmem:[%s4537_s9 + $0x1d0] sm:$0xff] }
0x1c20   :  { %v3368_v49 = vpop.eup %3367 }
0x1c21   :  { %v2057_v61 = vmul.f32 %v3368_v49, %v2055_v59  ;;  %v2060_v60 = vsub.f32 1.0, %v3368_v49  ;;  %v2068_v40 = vmul.f32 %v3368_v49, %v2066_v0  ;;  %v2297_v59 = vld [vmem:[%s4537_s9 + $0x108] sm:$0xff]  ;;  %v2282_v49 = vld [vmem:[%s4537_s9 + $0x90] sm:$0xff]  ;;  %v2267_v0 = vld [vmem:[%s4537_s9 + $0x18] sm:$0xff] }
0x1c23   :  { %v2058_v16 = vadd.f32 %v2057_v61, %v4087_v29 }
0x1c25   :  { %3369 = vtanh.f32 %v2058_v16 }
0x1c2f   :  { %v3370_v25 = vpop.eup %3369 }
0x1c30   :  { %2062 = vrot.lane.b32.xlu0 %v3370_v25, %s3410_s28  ;;  %v3158_v25 = vpack.c.bf16 %v2297_v59, %v2296_v58  ;;  %v2323_v58 = vld [vmem:[%s4537_s9 + $0x1d8] sm:$0xff] }
0x1ca2   :  { %v2063_v50 = vpop.permute.xlu0 %2062 }
0x1ca3   :  { %v2065_v39 = vmul.f32 %v2063_v50, %v2060_v60  ;;  %v2266_v60 = vld [vmem:[%s4537_s9 + $0x10] sm:$0xff] }
0x1ca5   :  { %v2069_v52 = vadd.f32 %v2068_v40, %v2065_v39  ;;  %v3128_v40 = vpack.c.bf16 %v2283_v5, %v2282_v49  ;;  %v3130_v39 = vpack.c.bf16 %v2267_v0, %v2266_v60  ;;  %v2274_v49 = vld [vmem:[%s4537_s9 + $0x50] sm:$0xff]  ;;  %v2293_v5 = vld [vmem:[%s4537_s9 + $0xe8] sm:$0xff]  ;;  %v3176_v60 = vpack.c.bf16 %v2323_v58, %v2322_v56 }
0x1ca6   :  { %v2306_v0 = vld [vmem:[%s4537_s9 + $0x150] sm:$0xff] }
0x1ca7   :  { %v2071_v62 = vrot.slane %v2069_v52, 4  ;;  %v2170_v21 = vrot.slane %v2069_v52, 6  ;;  %v2184_v22 = vrot.slane %v2069_v52, 2  ;;  %v3266_v15 = vpack.i.bf16 %v1658_v23, %v2069_v52  ;;  %v2281_v23 = vld [vmem:[%s4537_s9 + $0x88] sm:$0xff]  ;;  %v2314_v52 = vld [vmem:[%s4537_s9 + $0x190] sm:$0xff] }
0x1ca9   :  { %2072 = vrot.lane.b32.xlu1 %v2071_v62, %s3410_s28  ;;  %v2315_v62 = vld [vmem:[%s4537_s9 + $0x198] sm:$0xff] }
0x1cad   :  { %3242 = vrot.lane.b32.xlu1 %v3241_v26, %s3410_s28  ;;  %v3160_v26 = vpack.c.bf16 %v2315_v62, %v2314_v52  ;;  %v2325_v52 = vld [vmem:[%s4537_s9 + $0x1e8] sm:$0xff] }
0x1d1b   :  { %v2073_v36 = vpop.permute.xlu1 %2072 }
0x1d1c   :  { %2703 = vmatmul.mubr.msk.f32.vlgmr.msra.gmra.mrb[16].mxu1 %vm222_vm3, %v2073_v36  ;;  %v2299_v36 = vld [vmem:[%s4537_s9 + $0x118] sm:$0xff] }
0x1d1d   :  { %3159 = vmatpush3.bf16.msra.mxu1 %v3158_v25  ;;  %v2292_v25 = vld [vmem:[%s4537_s9 + $0xe0] sm:$0xff] }
0x1d1e   :  { %3161 = vmatprep.subr.bf16.mxu1 %v3160_v26  ;;  %v3148_v62 = vpack.c.bf16 %v2293_v5, %v2292_v25  ;;  %v2277_v26 = vld [vmem:[%s4537_s9 + $0x68] sm:$0xff] }
0x1d1f   :  { %v3243_v2 = vpop.permute.xlu1 %3242 }
0x1d20   :  { %v3245_v32 = vunpack.i.h.bf16 %v3243_v2  ;;  %v3244_v34 = vunpack.i.l.bf16 %v3243_v2 }
0x1d22   :  { %v2203_v42 = vsel %vm1041_vm4, %v3244_v34, %v3245_v32  ;;  %v2303_v32 = vld [vmem:[%s4537_s9 + $0x138] sm:$0xff]  ;;  %v2289_v34 = vld [vmem:[%s4537_s9 + $0xc8] sm:$0xff] }
0x1d23   :  { %v2239_v50 = vrot.slane %v2203_v42, 6  ;;  %v2273_v42 = vld [vmem:[%s4537_s9 + $0x48] sm:$0xff] }
0x1def   :  { %v2142_v27 = vpop.f32.mrb[16].mxu1 }
0x1df0   :  { %v2148_v37 = vrot.slane %v2142_v27, 2  ;;  %v2144_v30 = vpop.f32.mrb[17].mxu1  ;;  %v2284_v27 = vld [vmem:[%s4537_s9 + $0xa0] sm:$0xff] }
0x1df1   :  { %v2157_v7 = vadd.f32 %v4092_v47, %v2144_v30  ;;  %v3256_v47 = vpack.i.bf16 %v2210_v13, %v4202_v41  ;;  %v2264_v41 = vld [vmem:[%s4537_s9] sm:$0xff] }
0x1df2   :  { %v2150_v3 = vadd.f32 %v2148_v37, %v4085_v24  ;;  %v3246_v24 = vpack.i.bf16 %v2184_v22, %v4121_v20  ;;  %v2280_v20 = vld [vmem:[%s4537_s9 + $0x80] sm:$0xff]  ;;  %v3126_v54 = vpack.c.bf16 %v2265_v44, %v2264_v41  ;;  %v2285_v37 = vld [vmem:[%s4537_s9 + $0xa8] sm:$0xff]  ;;  %v2286_v22 = vld [vmem:[%s4537_s9 + $0xb0] sm:$0xff] }
0x1df3   :  { %v2159_v4 = vrot.slane %v2157_v7, 2  ;;  %v3124_v43 = vpack.c.bf16 %v2281_v23, %v2280_v20  ;;  %v2316_v7 = vld [vmem:[%s4537_s9 + $0x1a0] sm:$0xff]  ;;  %v2321_v23 = vld [vmem:[%s4537_s9 + $0x1c8] sm:$0xff]  ;;  %v2290_v44 = vld [vmem:[%s4537_s9 + $0xd0] sm:$0xff] }
0x1df4   :  { %v2704_v9 = vmul.f32 -1.442695, %v2150_v3  ;;  %v3162_v3 = vpack.c.bf16 %v2299_v36, %v2298_v1  ;;  %v2320_v20 = vld [vmem:[%s4537_s9 + $0x1c0] sm:$0xff]  ;;  %v3144_v59 = vpack.c.bf16 %v2291_v45, %v2290_v44 }
0x1df5   :  { %3125 = vmatprep.subr.bf16.mxu0 %v3124_v43  ;;  %v3172_v51 = vpack.c.bf16 %v2321_v23, %v2320_v20  ;;  %v2276_v1 = vld [vmem:[%s4537_s9 + $0x60] sm:$0xff] }
0x1df6   :  { %3371 = vpow2.f32 %v2704_v9  ;;  %3127 = vmatpush3.bf16.msra.mxu0 %v3126_v54  ;;  %v3132_v9 = vpack.c.bf16 %v2285_v37, %v2284_v27  ;;  %3163 = vmatpush3.bf16.msra.mxu1 %v3162_v3  ;;  %v2308_v37 = vld [vmem:[%s4537_s9 + $0x160] sm:$0xff]  ;;  %v3150_v3 = vpack.c.bf16 %v2277_v26, %v2276_v1  ;;  %v2478_v1 = vld [vmem:[%s4539_s11 + $0x10] sm:$0xff] }
0x1df7   :  { %3129 = vmatprep.subr.bf16.mxu0 %v3128_v40  ;;  %v2480_v26 = vld [vmem:[%s4539_s11 + $0x20] sm:$0xff] }
0x1dfa   :  { %3131 = vmatpush3.bf16.msra.mxu0 %v3130_v39  ;;  %v2324_v39 = vld [vmem:[%s4537_s9 + $0x1e0] sm:$0xff] }
0x1dfb   :  { %3133 = vmatprep.subr.bf16.mxu0 %v3132_v9  ;;  %v3180_v27 = vpack.c.bf16 %v2325_v52, %v2324_v39 }
0x1e00   :  { %v3372_v33 = vpop.eup %3371 }
0x1e01   :  { %v2154_v10 = vadd.f32 1.0, %v3372_v33  ;;  %v2268_v33 = vld [vmem:[%s4537_s9 + $0x20] sm:$0xff] }
0x1e03   :  { %3373 = vrcp.f32 %v2154_v10  ;;  %v2269_v10 = vld [vmem:[%s4537_s9 + $0x28] sm:$0xff] }
0x1e0d   :  { %v3374_v63 = vpop.eup %3373 }
0x1e0e   :  { %v2161_v6 = vmul.f32 %v3374_v63, %v2159_v4  ;;  %v2172_v14 = vmul.f32 %v3374_v63, %v2170_v21  ;;  %v2317_v21 = vld [vmem:[%s4537_s9 + $0x1a8] sm:$0xff] }
0x1e10   :  { %v2162_v55 = vadd.f32 %v2161_v6, %v4087_v29  ;;  %v2164_v29 = vsub.f32 1.0, %v3374_v63  ;;  %v2300_v63 = vld [vmem:[%s4537_s9 + $0x120] sm:$0xff]  ;;  %v2301_v6 = vld [vmem:[%s4537_s9 + $0x128] sm:$0xff] }
0x1e11   :  { %v3166_v2 = vpack.c.bf16 %v2301_v6, %v2300_v63  ;;  %v2326_v63 = vld [vmem:[%s4537_s9 + $0x1f0] sm:$0xff] }
0x1e12   :  { %3375 = vtanh.f32 %v2162_v55  ;;  %v3164_v55 = vpack.c.bf16 %v2317_v21, %v2316_v7  ;;  %v2279_v21 = vld [vmem:[%s4537_s9 + $0x78] sm:$0xff] }
0x1e14   :  { %3165 = vmatprep.subr.bf16.mxu1 %v3164_v55  ;;  %v2310_v55 = vld [vmem:[%s4537_s9 + $0x170] sm:$0xff] }
0x1e15   :  { %3167 = vmatpush3.bf16.msra.mxu1 %v3166_v2 }
0x1e1c   :  { %v3376_v28 = vpop.eup %3375 }
0x1e1d   :  { %2166 = vrot.lane.b32.xlu0 %v3376_v28, %s3410_s28  ;;  %v2287_v28 = vld [vmem:[%s4537_s9 + $0xb8] sm:$0xff] }
0x1e1e   :  { %v3136_v13 = vpack.c.bf16 %v2287_v28, %v2286_v22  ;;  %v2311_v22 = vld [vmem:[%s4537_s9 + $0x178] sm:$0xff] }
0x1e21   :  { %3247 = vrot.lane.b32.xlu0 %v3246_v24, %s3410_s28  ;;  %v2270_v24 = vld [vmem:[%s4537_s9 + $0x30] sm:$0xff] }
0x1e25   :  { %3257 = vrot.lane.b32.xlu0 %v3256_v47, %s3410_s28  ;;  %v2271_v47 = vld [vmem:[%s4537_s9 + $0x38] sm:$0xff] }
0x1e29   :  { %3267 = vrot.lane.b32.xlu0 %v3266_v15, %s3410_s28  ;;  %v2318_v15 = vld [vmem:[%s4537_s9 + $0x1b0] sm:$0xff] }
0x1e8f   :  { %v2167_v11 = vpop.permute.xlu0 %2166 }
0x1e90   :  { %v2169_v31 = vmul.f32 %v2167_v11, %v2164_v29  ;;  %v2319_v29 = vld [vmem:[%s4537_s9 + $0x1b8] sm:$0xff] }
0x1e92   :  { %v2173_v19 = vadd.f32 %v2172_v14, %v2169_v31  ;;  %v3134_v14 = vpack.c.bf16 %v2269_v10, %v2268_v33  ;;  %v2288_v31 = vld [vmem:[%s4537_s9 + $0xc0] sm:$0xff]  ;;  %v2294_v33 = vld [vmem:[%s4537_s9 + $0xf0] sm:$0xff]  ;;  %v2295_v10 = vld [vmem:[%s4537_s9 + $0xf8] sm:$0xff] }
0x1e93   :  { %v4230_v35 = vpop.permute.xlu0 %3247  ;;  %v3140_v41 = vpack.c.bf16 %v2289_v34, %v2288_v31  ;;  %v3152_v7 = vpack.c.bf16 %v2295_v10, %v2294_v33  ;;  %v3419_v31 = vmov 0.0|0.0   ;;  %v2566_v33 = vld [vmem:[%s4541_s13 + $0x8] sm:$0xff]  ;;  %v2567_v10 = vld [vmem:[%s4541_s13 + $0x10] sm:$0xff] }
0x1e94   :  { %v3251_v38 = vpack.i.bf16 %v2225_v18, %v2173_v19  ;;  %v2176_v57 = vrot.slane %v2173_v19, 6  ;;  %v3168_v19 = vpack.c.bf16 %v2319_v29, %v2318_v15  ;;  %v2302_v18 = vld [vmem:[%s4537_s9 + $0x130] sm:$0xff]  ;;  %3135 = vmatpush3.bf16.msra.mxu0 %v3134_v14  ;;  %v2327_v14 = vld [vmem:[%s4537_s9 + $0x1f8] sm:$0xff] }
0x1e95   :  { %3137 = vmatprep.subr.bf16.mxu0 %v3136_v13  ;;  %v3170_v43 = vpack.c.bf16 %v2303_v32, %v2302_v18  ;;  %v3184_v28 = vpack.c.bf16 %v2327_v14, %v2326_v63  ;;  %v3250_v13 = vunpack.i.h.bf16 %v4230_v35  ;;  %v2570_v63 = vld [vmem:[%s4541_s13 + $0x28] sm:$0xff] }
0x1e96   :  { %3252 = vrot.lane.b32.xlu1 %v3251_v38, %s3410_s28  ;;  %v3271_v30 = vpack.i.bf16 %v2239_v50, %v2176_v57  ;;  %v3138_v38 = vpack.c.bf16 %v2271_v47, %v2270_v24  ;;  %3169 = vmatprep.subr.bf16.mxu1 %v3168_v19  ;;  %v2304_v57 = vld [vmem:[%s4537_s9 + $0x140] sm:$0xff]  ;;  %v2307_v50 = vld [vmem:[%s4537_s9 + $0x158] sm:$0xff]  ;;  %v3186_v24 = vpack.c.bf16 %v2311_v22, %v2310_v55  ;;  %v3249_v47 = vunpack.i.l.bf16 %v4230_v35 }
0x1e97   :  { %v3258_v46 = vpop.permute.xlu0 %3257  ;;  %3171 = vmatpush3.bf16.msra.mxu1 %v3170_v43  ;;  %v3178_v36 = vpack.c.bf16 %v2307_v50, %v2306_v0  ;;  %v2705_v55 = vld [vmem:[%s4538_s10] ss:$0 sm:$0xff] }
0x1e98   :  { %v3260_v61 = vunpack.i.h.bf16 %v3258_v46  ;;  %v3259_v16 = vunpack.i.l.bf16 %v3258_v46  ;;  %v2272_v46 = vld [vmem:[%s4537_s9 + $0x40] sm:$0xff]  ;;  %3139 = vmatpush3.bf16.msra.mxu0 %v3138_v38  ;;  %3173 = vmatprep.subr.bf16.mxu1 %v3172_v51  ;;  %v2188_v2 = vsel %vm1041_vm4, %v3249_v47, %v3250_v13 }
0x1e99   :  { %v3142_v54 = vpack.c.bf16 %v2273_v42, %v2272_v46  ;;  %3141 = vmatprep.subr.bf16.mxu0 %v3140_v41  ;;  %v2231_v32 = vrot.slane %v2188_v2, 2  ;;  %v2571_v2 = vld [vmem:[%s4541_s13 + $0x30] sm:$0xff] }
0x1e9a   :  { %3262 = vrot.lane.b32.xlu1 %v3261_v53, %s3410_s28  ;;  %v2214_v4 = vsel %vm1041_vm4, %v3259_v16, %v3260_v61  ;;  %v2305_v53 = vld [vmem:[%s4537_s9 + $0x148] sm:$0xff]  ;;  %v2275_v61 = vld [vmem:[%s4537_s9 + $0x58] sm:$0xff] }
0x1e9b   :  { %v2244_v11 = vrot.slane %v2214_v4, 2  ;;  %v3174_v16 = vpack.c.bf16 %v2305_v53, %v2304_v57  ;;  %v3146_v40 = vpack.c.bf16 %v2275_v61, %v2274_v49  ;;  %v2278_v4 = vld [vmem:[%s4537_s9 + $0x70] sm:$0xff]  ;;  %v3268_v45 = vpop.permute.xlu0 %3267  ;;  %v2477_v49 = vld [vmem:[%s4539_s11 + $0x8] sm:$0xff]  ;;  %v2206_v61 = vsel %vm1041_vm4, %v4185_v8, %v4165_v12  ;;  %v2479_v12 = vld [vmem:[%s4539_s11 + $0x18] sm:$0xff] }
0x1e9c   :  { %3143 = vmatpush3.bf16.msra.mxu0 %v3142_v54  ;;  %v3154_v6 = vpack.c.bf16 %v2279_v21, %v2278_v4  ;;  %v3270_v51 = vunpack.i.h.bf16 %v3268_v45  ;;  %v3269_v57 = vunpack.i.l.bf16 %v3268_v45  ;;  %v2568_v4 = vld [vmem:[%s4541_s13 + $0x18] sm:$0xff] }
0x1e9d   :  { %3145 = vmatprep.subr.bf16.mxu0 %v3144_v59  ;;  %3175 = vmatpush3.bf16.msra.mxu1 %v3174_v16  ;;  %v2476_v59 = vld [vmem:[%s4539_s11] sm:$0xff]  ;;  %v3204_v21 = vpack.c.bf16 %v2568_v4, %v2567_v10 }
0x1e9e   :  { %3272 = vrot.lane.b32.xlu1 %v3271_v30, %s3410_s28  ;;  %3177 = vmatprep.subr.bf16.mxu1 %v3176_v60  ;;  %v2309_v30 = vld [vmem:[%s4537_s9 + $0x168] sm:$0xff]  ;;  %v2221_v53 = vsel %vm1041_vm4, %v3269_v57, %v3270_v51  ;;  %v3189_v39 = vpack.c.bf16 %v2477_v49, %v2476_v59 }
0x1e9f   :  { %v3182_v9 = vpack.c.bf16 %v2309_v30, %v2308_v37  ;;  %v2249_v16 = vrot.slane %v2221_v53, 4  ;;  %v2482_v37 = vld [vmem:[%s4539_s11 + $0x30] sm:$0xff]  ;;  %v2483_v30 = vld [vmem:[%s4539_s11 + $0x38] sm:$0xff] }
0x1ea0   :  { %3147 = vmatpush3.bf16.msra.mxu0 %v3146_v40 }
0x1ea1   :  { %3149 = vmatprep.subr.bf16.mxu0 %v3148_v62  ;;  %3179 = vmatpush3.bf16.msra.mxu1 %v3178_v36  ;;  %v2481_v36 = vld [vmem:[%s4539_s11 + $0x28] sm:$0xff] }
0x1ea2   :  { %2245 = vrot.lane.b32.xlu1 %v2244_v11, %s3410_s28  ;;  %3181 = vmatprep.subr.bf16.mxu1 %v3180_v27  ;;  %v3195_v27 = vpack.c.bf16 %v2481_v36, %v2480_v26 }
0x1ea4   :  { %3151 = vmatpush3.bf16.msra.mxu0 %v3150_v3  ;;  %v3198_v3 = vpack.c.bf16 %v2483_v30, %v2482_v37 }
0x1ea5   :  { %3183 = vmatpush3.bf16.msra.mxu1 %v3182_v9  ;;  %3153 = vmatprep.subr.bf16.mxu0 %v3152_v7  ;;  %v2565_v9 = vld [vmem:[%s4541_s13] sm:$0xff] }
0x1ea6   :  { %3185 = vmatprep.subr.bf16.mxu1 %v3184_v28  ;;  %v3201_v7 = vpack.c.bf16 %v2566_v33, %v2565_v9 }
0x1ea8   :  { %3155 = vmatpush3.bf16.msra.mxu0 %v3154_v6 }
0x1ea9   :  { %3187 = vmatpush3.bf16.msra.mxu1 %v3186_v24  ;;  %3188 = vmatprep.subr.bf16.mxu0 %v3419_v31 }
0x1eaa   :  { %3200 = vmatprep.subr.bf16.mxu1 %v3419_v31 }
0x1f08   :  { %v3253_v15 = vpop.permute.xlu1 %3252 }
0x1f09   :  { %v3255_v29 = vunpack.i.h.bf16 %v3253_v15  ;;  %v3254_v11 = vunpack.i.l.bf16 %v3253_v15 }
0x1f0b   :  { %v2229_v19 = vsel %vm1041_vm4, %v3254_v11, %v3255_v29 }
0x1f0c   :  { %v3263_v18 = vpop.permute.xlu1 %3262  ;;  %v2252_v34 = vrot.slane %v2229_v19, 6 }
0x1f0d   :  { %v3265_v38 = vunpack.i.h.bf16 %v3263_v18  ;;  %v3264_v35 = vunpack.i.l.bf16 %v3263_v18  ;;  %v2706_v18 = vld [vmem:[%s4540_s12] ss:$0 sm:$0xff] }
0x1f0e   :  { %v3276_v20 = vpack.i.bf16 %v2252_v34, %v2231_v32 }
0x1f0f   :  { %v2195_v23 = vsel %vm1041_vm4, %v3264_v35, %v3265_v38 }
0x1f10   :  { %v2236_v41 = vrot.slane %v2195_v23, 4  ;;  %3277 = vrot.lane.b32.xlu0 %v3276_v20, %s3410_s28  ;;  %v3273_v46 = vpop.permute.xlu1 %3272  ;;  %v2708_v20 = vld [vmem:[%s4542_s14] ss:$0 sm:$0xff] }
0x1f11   :  { %v3275_v42 = vunpack.i.h.bf16 %v3273_v46  ;;  %v3274_v54 = vunpack.i.l.bf16 %v3273_v46 }
0x1f13   :  { %v2257_v43 = vsel %vm222_vm3, %v2236_v41, %v3275_v42  ;;  %v2180_v60 = vsel %vm1041_vm4, %v4103_v48, %v3274_v54  ;;  %v3192_v48 = vpack.c.bf16 %v2479_v12, %v2478_v1 }
0x1f14   :  { %v2261_v44 = vmax.f32 %v2257_v43, 0.0  ;;  %v2246_v56 = vpop.permute.xlu1 %2245 }
0x1f15   :  { %v2258_v0 = vsel %vm222_vm3, %v2206_v61, %v2246_v56 }
0x1f16   :  { %2399 = vmatprep.mubr.f32.mxu0 %v2261_v44  ;;  %v2262_v8 = vmax.f32 %v2258_v0, 0.0 }
0x1f82   :  { %v3278_v58 = vpop.permute.xlu0 %3277 }
0x1f83   :  { %v3280_v25 = vunpack.i.h.bf16 %v3278_v58  ;;  %v3279_v5 = vunpack.i.l.bf16 %v3278_v58 }
0x1f85   :  { %v2256_v50 = vsel %vm222_vm3, %v2180_v60, %v3279_v5  ;;  %v2259_v40 = vsel %vm222_vm3, %v2249_v16, %v3280_v25 }
0x1f86   :  { %v2260_v52 = vmax.f32 %v2256_v50, 0.0  ;;  %v2263_v62 = vmax.f32 %v2259_v40, 0.0 }
0x1f88   :  { %2400 = vmatmul.mubr.f32.vlgmr.msra.gmra.mrb[18].mxu0 %v2260_v52  ;;  %2469 = vmatprep.mubr.f32.mxu1 %v2263_v62 }
0x1f89   :  { %2470 = vmatmul.mubr.f32.vlgmr.msra.gmra.mrb[18].mxu1 %v2262_v8  ;;  %3190 = vmatpush3.bf16.msra.mxu0 %v3189_v39 }
0x1f8a   :  { %3191 = vmatprep.subr.bf16.mxu0 %v3419_v31  ;;  %2814 = vmatprep.mubr.msk.f32.mxu0 %vm3420_vm5, %v3403_v17 }
0x1f8b   :  { %2833 = vmatprep.mubr.msk.f32.mxu1 %vm3420_vm5, %v3403_v17  ;;  %3202 = vmatpush3.bf16.msra.mxu1 %v3201_v7  ;;  %v2569_v17 = vld [vmem:[%s4541_s13 + $0x20] sm:$0xff] }
0x1f8c   :  { %3203 = vmatprep.subr.bf16.mxu1 %v3419_v31  ;;  %v3207_v6 = vpack.c.bf16 %v2570_v63, %v2569_v17 }
0x1f8d   :  { %3193 = vmatpush3.bf16.msra.mxu0 %v3192_v48 }
0x1f8e   :  { %3194 = vmatprep.subr.bf16.mxu0 %v3419_v31 }
0x1f8f   :  { %3205 = vmatpush3.bf16.msra.mxu1 %v3204_v21 }
0x1f90   :  { %3206 = vmatprep.subr.bf16.mxu1 %v3419_v31 }
0x1f91   :  { %3196 = vmatpush3.bf16.msra.mxu0 %v3195_v27 }
0x1f92   :  { %3197 = vmatprep.subr.bf16.mxu0 %v3419_v31 }
0x1f93   :  { %3208 = vmatpush3.bf16.msra.mxu1 %v3207_v6 }
0x1f94   :  { %3209 = vmatprep.subr.bf16.mxu1 %v3419_v31  ;;  %v2572_v31 = vld [vmem:[%s4541_s13 + $0x38] sm:$0xff]  ;;  %s3377_s13 = scalar_lea.vmem %s2662_s8, 32 }
0x1f95   :  { %3199 = vmatpush3.bf16.msra.mxu0 %v3198_v3  ;;  %v3210_v19 = vpack.c.bf16 %v2572_v31, %v2571_v2  ;;  %p3378_p0 = scmp.ne.s32.totalorder %s2662_s8, %s3377_s13  ;;  %p3383_p2 = scmp.lt.s32.totalorder %s3377_s13, %s3377_s13 }
0x1f97   :  { %3211 = vmatpush3.bf16.msra.mxu1 %v3210_v19  ;;  %p3384_p3 = por %p3383_p2, %p3382_p1 }
0x1f99   :  { %p3385_p4 = pnand %p3384_p3, %p3378_p0 }
0x205b   :  { %v2742_v14 = vpop.f32.mrb[18].mxu0 }
0x205c   :  { %v2743_v22 = vpop.f32.mrb[19].mxu0  ;;  %v2777_v28 = vpop.f32.mrb[18].mxu1 }
0x205d   :  { %v2744_v24 = vadd.f32 %v2743_v22, %v2742_v14  ;;  %v2778_v13 = vpop.f32.mrb[19].mxu1 }
0x205e   :  { %v2779_v47 = vadd.f32 %v2778_v13, %v2777_v28 }
0x205f   :  { %v2402_v15 = vadd.f32 %v2744_v24, %v2705_v55 }
0x2061   :  { %v2472_v29 = vadd.f32 %v2779_v47, %v2402_v15 }
0x2063   :  { %v2475_v11 = vmax.f32 %v2472_v29, 0.0 }
0x2065   :  { %2815 = vmatmul.mubr.msk.f32.vlgmr.msra.gmra.mrb[20].mxu0 %vm222_vm3, %v2475_v11 }
0x2138   :  { %v2560_v32 = vpop.f32.mrb[20].mxu0 }
0x2139   :  { %v2561_v34 = vadd.f32 %v2706_v18, %v2560_v32  ;;  %v2816_v38 = vpop.f32.mrb[21].mxu0 }
0x213b   :  { %v2564_v35 = vmax.f32 %v2561_v34, 0.0 }
0x213d   :  { %2834 = vmatmul.mubr.msk.f32.vlgmr.msra.gmra.mrb[20].mxu1 %vm222_vm3, %v2564_v35 }
0x2210   :  { %v2649_v23 = vpop.f32.mrb[20].mxu1 }
0x2211   :  { %v2650_v41 = vadd.f32 %v2708_v20, %v2649_v23  ;;  %v2835_v46 = vpop.f32.mrb[21].mxu1 }
0x2213   :  { %2654 = vst.msk [vmem:[#allocation2] sm:$0x3] %vm2653_vm6, %v2650_v41 }
0x2214   :  { %3388 = shalt.err (!%p3385_p4)
}
0x2215   :  { %s3389_s23 = scalar_lea.hbm %s4543_s15, 32 }
0x2216   :  { %p3390_p5 = scmp.ne.s32.totalorder %s4543_s15, %s3389_s23  ;;  %p3393_p6 = scmp.lt.u32.totalorder %s3389_s23, %s4543_s15 }
0x2218   :  { %p3395_p7 = pnand %p3393_p6, %p3390_p5 }
0x221a   :  { %3398 = shalt.err (!%p3395_p7)
}
0x221b   :  { %2664 = dma.vmem_to_hbm [thread:$0]  %s2662_s8, 32, %s4543_s15, [#allocation3]  }
0x221c   :  { %3399 = dma.done.wait [#allocation3], 32  }
0x221d   :  { %3400 = vsyncadd [#allocation3], 4294967264 }
0x221e   :  { %2668 = vsyncpa [#allocation3], 1 }

</bundles_post_ra>
